<compile_context>
chip_gen: v7x
topology: tpu7x:2x2x1
jax: 0.10.0
libtpu: 0.0.40
codegen_flags: <defaults>
</compile_context>

<pallas_src>
import functools

import jax
import jax.numpy as jnp
from jax.experimental import pallas as pl
from jax.experimental.pallas import tpu as pltpu

# ---- model hyper-parameters (match the PyTorch __init__ defaults) ----------------
NUM_LAYERS = 2
TASK_DIM = 8          # number of tasks == sequence length
MODEL_DIM = 128
NUM_HEADS = 2
FFN_DIM = 128
HEAD_DIM = MODEL_DIM // NUM_HEADS
LN_EPS = 1e-5


# ----------------------------------------------------------------------------------
# Pallas kernel
# ----------------------------------------------------------------------------------
def _layer_norm(x, w, b):
    mu = jnp.mean(x, axis=-1, keepdims=True)
    var = jnp.mean(jnp.square(x - mu), axis=-1, keepdims=True)
    return (x - mu) * jax.lax.rsqrt(var + LN_EPS) * w + b


def hoi_fused_kernel(x_ref, bias_ref,
                     wqkv_ref, bqkv_ref, wo_ref, bo_ref,
                     ln1w_ref, ln1b_ref, w1_ref, b1_ref, w2_ref, b2_ref,
                     ln2w_ref, ln2b_ref, wf_ref, bf_ref,
                     out_ref, res_ref, *attn_refs):
    """Both encoder layers + final linear head for one batch chunk."""
    bb, T, D = x_ref.shape
    M = bb * T
    T2 = NUM_HEADS * T                       # stacked-head key axis (16 lanes)

    # Fold (batch, task) into one M dimension for all dense matmuls.
    x2 = x_ref[...].reshape(M, D)
    # Additive key mask, already duplicated per head on the host: (bb, 1, H*T).
    bias2 = bias_ref[...]

    # {0,1} lane masks selecting each head's 64-lane slice of the 128-lane feature dim.
    lane = jax.lax.broadcasted_iota(jnp.int32, (1, 1, D), 2)
    head_masks = [
        ((lane >= h * HEAD_DIM) & (lane < (h + 1) * HEAD_DIM)).astype(jnp.float32)
        for h in range(NUM_HEADS)
    ]
    # Segment selector over the stacked-key axis: True on head-0's T lanes.
    seg_lane = jax.lax.broadcasted_iota(jnp.int32, (1, 1, T2), 2)
    seg0 = seg_lane < T
    NEG = jnp.float32(-1e30)

    for l in range(NUM_LAYERS):                          # static python loop (2 layers)
        # ---- fused QKV projection: one (M, D) @ (D, 3D) matmul ----
        qkv = jnp.dot(x2, wqkv_ref[l], preferred_element_type=jnp.float32) + bqkv_ref[l]
        q3 = qkv[:, 0 * D:1 * D].reshape(bb, T, D)       # lane-tile-aligned slices
        k3 = qkv[:, 1 * D:2 * D].reshape(bb, T, D)
        v3 = qkv[:, 2 * D:3 * D].reshape(bb, T, D)

        # ---- both heads in ONE batched matmul: stack head-masked K/V on tokens ----
        # Masking K (or V) to head h's lanes makes the full-128-lane contraction
        # equal the per-head contraction, so no 64-lane slicing / relayout is needed.
        k_cat = jnp.concatenate([k3 * head_masks[h] for h in range(NUM_HEADS)], axis=1)
        v_cat = jnp.concatenate([v3 * head_masks[h] for h in range(NUM_HEADS)], axis=1)

        # scores for both heads: (bb, T, H*T); 1/sqrt(head_dim) already in Wq.
        s = jnp.einsum('bqd,bkd->bqk', q3, k_cat, preferred_element_type=jnp.float32)
        z = s + bias2

        # ---- segmented (per-head) softmax over the H*T lane axis ----
        m0 = jnp.max(jnp.where(seg0, z, NEG), axis=-1, keepdims=True)
        m1 = jnp.max(jnp.where(seg0, NEG, z), axis=-1, keepdims=True)
        e = jnp.exp(z - jnp.where(seg0, m0, m1))
        den0 = jnp.sum(jnp.where(seg0, e, 0.0), axis=-1, keepdims=True)
        den1 = jnp.sum(jnp.where(seg0, 0.0, e), axis=-1, keepdims=True)
        p = e * jnp.where(seg0, 1.0 / den0, 1.0 / den1)  # (bb, T, H*T)
        attn_refs[l][...] = p                            # lane-contiguous store

        # ---- context for both heads in ONE batched matmul ----
        ctx = jnp.einsum('bqk,bkd->bqd', p, v_cat,
                         preferred_element_type=jnp.float32).reshape(M, D)

        # ---- output projection + residual + LayerNorm ----
        ao = jnp.dot(ctx, wo_ref[l], preferred_element_type=jnp.float32) + bo_ref[l]
        y = _layer_norm(x2 + ao, ln1w_ref[l], ln1b_ref[l])

        # ---- feed-forward + residual + LayerNorm ----
        h1 = jnp.maximum(
            jnp.dot(y, w1_ref[l], preferred_element_type=jnp.float32) + b1_ref[l], 0.0)
        ff = jnp.dot(h1, w2_ref[l], preferred_element_type=jnp.float32) + b2_ref[l]
        x2 = _layer_norm(y + ff, ln2w_ref[l], ln2b_ref[l])

    y3 = x2.reshape(bb, T, D)
    out_ref[...] = y3
    # final_output: Linear(D, 1) followed by squeeze(-1), fused as a lane reduction.
    res_ref[...] = jnp.sum(y3 * wf_ref[...], axis=-1) + bf_ref[...]


# ----------------------------------------------------------------------------------
# Wrapper around pallas_call
# ----------------------------------------------------------------------------------
_WEIGHT_ORDER = ('wqkv', 'bqkv', 'wo', 'bo', 'ln1_w', 'ln1_b',
                 'w1', 'b1', 'w2', 'b2', 'ln2_w', 'ln2_b', 'final_w', 'final_b')


@functools.partial(jax.jit, static_argnames=("block_b",))
def hoi_net_forward(inputs, index, task_embedding, packed, *, block_b=128):
    """inputs: (B, T) float task-group gate; index: (B, T) int32 task ids."""
    emb = task_embedding[index]                          # embedding gather -- JAX glue
    B, T, D = emb.shape
    T2 = NUM_HEADS * T

    # Additive key mask: 0 where the task is present, -1e9 where absent,
    # duplicated for both heads along the stacked-key axis.  (B, 1, H*T)
    key_bias = (inputs.astype(jnp.float32) - 1.0) * 1e9          # (B, T)
    bias2 = jnp.tile(key_bias, (1, NUM_HEADS))[:, None, :]       # (B, 1, H*T)

    bb = B if B <= block_b else block_b                  # batch rows per grid step
    grid = (pl.cdiv(B, bb),)

    weights = [packed[k] for k in _WEIGHT_ORDER]
    in_specs = [
        pl.BlockSpec((bb, T, D), lambda b: (b, 0, 0)),          # activations: batch chunk
        pl.BlockSpec((bb, 1, T2), lambda b: (b, 0, 0)),         # key-mask bias
    ] + [pl.BlockSpec(w.shape, lambda b, n=w.ndim: (0,) * n)    # weights: whole array,
         for w in weights]                                      # VMEM-resident

    out_specs = tuple(
        [pl.BlockSpec((bb, T, D), lambda b: (b, 0, 0)),         # encoder output
         pl.BlockSpec((bb, T), lambda b: (b, 0))]               # final result
        + [pl.BlockSpec((bb, T, T2), lambda b: (b, 0, 0))] * NUM_LAYERS)
    out_shape = tuple(
        [jax.ShapeDtypeStruct((B, T, D), jnp.float32),
         jax.ShapeDtypeStruct((B, T), jnp.float32)]
        + [jax.ShapeDtypeStruct((B, T, T2), jnp.float32)] * NUM_LAYERS)

    outs = pl.pallas_call(
        hoi_fused_kernel,
        out_shape=out_shape,
        grid=grid,
        in_specs=in_specs,
        out_specs=out_specs,
        compiler_params=pltpu.CompilerParams(
            dimension_semantics=("parallel",)),   # batch chunks -> both TCs on v7x
    )(emb, bias2, *weights)

    encoder_output, result = outs[0], outs[1]
    # (B, T, H*T) -> (B, H, T, T): trivial XLA reshape/transpose outside the kernel.
    attentions = [a.reshape(B, T, NUM_HEADS, T).transpose(0, 2, 1, 3)
                  for a in outs[2:]]
    task_embedding_out = emb[0]                          # (T, D)
    # TODO(synk): the PyTorch forward also re-runs each encoder on test_output[0]
    # with an all-ones mask, but those values are never returned or used -> skipped.
    # NOTE: self.task_output heads are unused in the reference forward -> not built.
    return result, attentions, task_embedding_out, encoder_output


# ----------------------------------------------------------------------------------
# Deterministic parameter construction (synthetic, not a checkpoint)
# ----------------------------------------------------------------------------------
def init_params(key):
    keys = iter(jax.random.split(key, 64))

    def nrm(shape, scale=0.05):
        return (scale * jax.random.normal(next(keys), shape)).astype(jnp.float32)

    params = {'task_embedding': nrm((TASK_DIM, MODEL_DIM), 1.0)}
    layers = []
    for _ in range(NUM_LAYERS):
        layers.append({
            # attention projections, stored as (in, out)
            'wq': nrm((MODEL_DIM, MODEL_DIM)), 'bq': jnp.zeros((1, MODEL_DIM), jnp.float32),
            'wk': nrm((MODEL_DIM, MODEL_DIM)), 'bk': jnp.zeros((1, MODEL_DIM), jnp.float32),
            'wv': nrm((MODEL_DIM, MODEL_DIM)), 'bv': jnp.zeros((1, MODEL_DIM), jnp.float32),
            'wo': nrm((MODEL_DIM, MODEL_DIM)), 'bo': jnp.zeros((1, MODEL_DIM), jnp.float32),
            'ln1_w': jnp.ones((1, MODEL_DIM), jnp.float32),
            'ln1_b': jnp.zeros((1, MODEL_DIM), jnp.float32),
            # feed-forward
            'w1': nrm((MODEL_DIM, FFN_DIM)), 'b1': jnp.zeros((1, FFN_DIM), jnp.float32),
            'w2': nrm((FFN_DIM, MODEL_DIM)), 'b2': jnp.zeros((1, MODEL_DIM), jnp.float32),
            'ln2_w': jnp.ones((1, MODEL_DIM), jnp.float32),
            'ln2_b': jnp.zeros((1, MODEL_DIM), jnp.float32),
        })
    params['layers'] = layers
    # final_output = nn.Linear(ffn_dim, 1)
    params['final_w'] = nrm((1, FFN_DIM))
    params['final_b'] = jnp.zeros((1, 1), jnp.float32)
    return params


def pack_params(params):
    """Pack per-layer weights into the fused / stacked form the kernel consumes.

    * Wq|Wk|Wv (and biases) are concatenated into a single (D, 3D) QKV weight.
    * The 1/sqrt(head_dim) attention scale is folded into Wq / bq here (offline),
      so the kernel never multiplies scores by it.
    * Per-layer tensors are stacked on a leading layer axis (static in-kernel index).
    """
    scale = 1.0 / (HEAD_DIM ** 0.5)
    layers = params['layers']

    def stack(name):
        return jnp.stack([lp[name] for lp in layers])

    wqkv = jnp.stack([jnp.concatenate(
        [lp['wq'] * scale, lp['wk'], lp['wv']], axis=1) for lp in layers])
    bqkv = jnp.stack([jnp.concatenate(
        [lp['bq'] * scale, lp['bk'], lp['bv']], axis=1) for lp in layers])

    return {
        'wqkv': wqkv, 'bqkv': bqkv,
        'wo': stack('wo'), 'bo': stack('bo'),
        'ln1_w': stack('ln1_w'), 'ln1_b': stack('ln1_b'),
        'w1': stack('w1'), 'b1': stack('b1'),
        'w2': stack('w2'), 'b2': stack('b2'),
        'ln2_w': stack('ln2_w'), 'ln2_b': stack('ln2_b'),
        'final_w': params['final_w'].reshape(1, 1, MODEL_DIM),
        'final_b': params['final_b'].reshape(1, 1),
    }


# ----------------------------------------------------------------------------------
if __name__ == "__main__":
    key = jax.random.PRNGKey(0)
    pkey, mkey = jax.random.split(key)
    params = init_params(pkey)
    packed = pack_params(params)

    B = 2
    # task indices 0..TASK_DIM-1 for every batch element (as the module implies)
    index = jnp.tile(jnp.arange(TASK_DIM, dtype=jnp.int32)[None, :], (B, 1))
    # task-group gate: which tasks are in the group (ensure at least one per row)
    inputs = (jax.random.uniform(mkey, (B, TASK_DIM)) > 0.5).astype(jnp.float32)
    inputs = inputs.at[:, 0].set(1.0)

    result, attentions, task_embedding, encoder_output = hoi_net_forward(
        inputs, index, params['task_embedding'], packed)
    jax.block_until_ready((result, attentions, task_embedding, encoder_output))

    assert result.shape == (B, TASK_DIM)
    assert encoder_output.shape == (B, TASK_DIM, MODEL_DIM)
    assert task_embedding.shape == (TASK_DIM, MODEL_DIM)
    assert len(attentions) == NUM_LAYERS
    assert attentions[0].shape == (B, NUM_HEADS, TASK_DIM, TASK_DIM)
    assert bool(jnp.all(jnp.isfinite(result)))
    assert bool(jnp.all(jnp.isfinite(encoder_output)))
    # attention rows are probability distributions per head
    row_sums = jnp.sum(attentions[0], axis=-1)
    assert bool(jnp.all(jnp.abs(row_sums - 1.0) < 1e-4))

    print("KERNEL_OK")
</pallas_src>

<mosaic_0001>
module attributes {stable_mosaic.version = 11 : i64} {
  func.func @hoi_fused_kernel(%arg0: i32, %arg1: memref<2x8x128xf32, #tpu.memory_space<vmem>>, %arg2: memref<2x1x16xf32, #tpu.memory_space<vmem>>, %arg3: memref<2x128x384xf32, #tpu.memory_space<vmem>>, %arg4: memref<2x1x384xf32, #tpu.memory_space<vmem>>, %arg5: memref<2x128x128xf32, #tpu.memory_space<vmem>>, %arg6: memref<2x1x128xf32, #tpu.memory_space<vmem>>, %arg7: memref<2x1x128xf32, #tpu.memory_space<vmem>>, %arg8: memref<2x1x128xf32, #tpu.memory_space<vmem>>, %arg9: memref<2x128x128xf32, #tpu.memory_space<vmem>>, %arg10: memref<2x1x128xf32, #tpu.memory_space<vmem>>, %arg11: memref<2x128x128xf32, #tpu.memory_space<vmem>>, %arg12: memref<2x1x128xf32, #tpu.memory_space<vmem>>, %arg13: memref<2x1x128xf32, #tpu.memory_space<vmem>>, %arg14: memref<2x1x128xf32, #tpu.memory_space<vmem>>, %arg15: memref<1x1x128xf32, #tpu.memory_space<vmem>>, %arg16: memref<1x1xf32, #tpu.memory_space<vmem>>, %arg17: memref<2x8x128xf32, #tpu.memory_space<vmem>>, %arg18: memref<2x8xf32, #tpu.memory_space<vmem>>, %arg19: memref<2x8x16xf32, #tpu.memory_space<vmem>>, %arg20: memref<2x8x16xf32, #tpu.memory_space<vmem>>) attributes {dimension_semantics = [#tpu.dimension_semantics<parallel>], iteration_bounds = array<i64: 1>, scalar_prefetch = 0 : i64, scratch_operands = 0 : i64, tpu.core_type = #tpu.core_type<tc>, window_params = [{transform_indices = @transform_0, window_bounds = array<i64: 2, 8, 128>}, {transform_indices = @transform_1, window_bounds = array<i64: 2, 1, 16>}, {pipeline_mode = #tpu.pipeline_mode<synchronous>, transform_indices = @transform_2, window_bounds = array<i64: 2, 128, 384>}, {pipeline_mode = #tpu.pipeline_mode<synchronous>, transform_indices = @transform_3, window_bounds = array<i64: 2, 1, 384>}, {pipeline_mode = #tpu.pipeline_mode<synchronous>, transform_indices = @transform_4, window_bounds = array<i64: 2, 128, 128>}, {pipeline_mode = #tpu.pipeline_mode<synchronous>, transform_indices = @transform_5, window_bounds = array<i64: 2, 1, 128>}, {pipeline_mode = #tpu.pipeline_mode<synchronous>, transform_indices = @transform_6, window_bounds = array<i64: 2, 1, 128>}, {pipeline_mode = #tpu.pipeline_mode<synchronous>, transform_indices = @transform_7, window_bounds = array<i64: 2, 1, 128>}, {pipeline_mode = #tpu.pipeline_mode<synchronous>, transform_indices = @transform_8, window_bounds = array<i64: 2, 128, 128>}, {pipeline_mode = #tpu.pipeline_mode<synchronous>, transform_indices = @transform_9, window_bounds = array<i64: 2, 1, 128>}, {pipeline_mode = #tpu.pipeline_mode<synchronous>, transform_indices = @transform_10, window_bounds = array<i64: 2, 128, 128>}, {pipeline_mode = #tpu.pipeline_mode<synchronous>, transform_indices = @transform_11, window_bounds = array<i64: 2, 1, 128>}, {pipeline_mode = #tpu.pipeline_mode<synchronous>, transform_indices = @transform_12, window_bounds = array<i64: 2, 1, 128>}, {pipeline_mode = #tpu.pipeline_mode<synchronous>, transform_indices = @transform_13, window_bounds = array<i64: 2, 1, 128>}, {pipeline_mode = #tpu.pipeline_mode<synchronous>, transform_indices = @transform_14, window_bounds = array<i64: 1, 1, 128>}, {pipeline_mode = #tpu.pipeline_mode<synchronous>, transform_indices = @transform_15, window_bounds = array<i64: 1, 1>}, {transform_indices = @transform_16, window_bounds = array<i64: 2, 8, 128>}, {transform_indices = @transform_17, window_bounds = array<i64: 2, 8>}, {transform_indices = @transform_18, window_bounds = array<i64: 2, 8, 16>}, {transform_indices = @transform_19, window_bounds = array<i64: 2, 8, 16>}]} {
    %c0 = arith.constant 0 : index
    %c0_0 = arith.constant 0 : index
    %c0_1 = arith.constant 0 : index
    %0 = vector.load %arg1[%c0, %c0_0, %c0_1] : memref<2x8x128xf32, #tpu.memory_space<vmem>>, vector<2x8x128xf32>
    %1 = vector.shape_cast %0 : vector<2x8x128xf32> to vector<16x128xf32>
    %c0_2 = arith.constant 0 : index
    %c0_3 = arith.constant 0 : index
    %c0_4 = arith.constant 0 : index
    %2 = vector.load %arg2[%c0_2, %c0_3, %c0_4] : memref<2x1x16xf32, #tpu.memory_space<vmem>>, vector<2x1x16xf32>
    %3 = tpu.iota {dimensions = array<i32: 2>} : vector<1x1x128xi32>
    %c0_i32 = arith.constant 0 : i32
    %4 = vector.broadcast %c0_i32 : i32 to vector<1x1x128xi32>
    %5 = arith.cmpi sge, %3, %4 : vector<1x1x128xi32>
    %c64_i32 = arith.constant 64 : i32
    %6 = vector.broadcast %c64_i32 : i32 to vector<1x1x128xi32>
    %7 = arith.cmpi slt, %3, %6 : vector<1x1x128xi32>
    %8 = arith.andi %5, %7 : vector<1x1x128xi1>
    %9 = arith.extui %8 : vector<1x1x128xi1> to vector<1x1x128xi32>
    %10 = arith.sitofp %9 : vector<1x1x128xi32> to vector<1x1x128xf32>
    %c64_i32_5 = arith.constant 64 : i32
    %11 = vector.broadcast %c64_i32_5 : i32 to vector<1x1x128xi32>
    %12 = arith.cmpi sge, %3, %11 : vector<1x1x128xi32>
    %c128_i32 = arith.constant 128 : i32
    %13 = vector.broadcast %c128_i32 : i32 to vector<1x1x128xi32>
    %14 = arith.cmpi slt, %3, %13 : vector<1x1x128xi32>
    %15 = arith.andi %12, %14 : vector<1x1x128xi1>
    %16 = arith.extui %15 : vector<1x1x128xi1> to vector<1x1x128xi32>
    %17 = arith.sitofp %16 : vector<1x1x128xi32> to vector<1x1x128xf32>
    %18 = tpu.iota {dimensions = array<i32: 2>} : vector<1x1x16xi32>
    %c8_i32 = arith.constant 8 : i32
    %19 = vector.broadcast %c8_i32 : i32 to vector<1x1x16xi32>
    %20 = arith.cmpi slt, %18, %19 : vector<1x1x16xi32>
    %c0_6 = arith.constant 0 : index
    %c0_7 = arith.constant 0 : index
    %c0_8 = arith.constant 0 : index
    %21 = vector.load %arg3[%c0_6, %c0_7, %c0_8] : memref<2x128x384xf32, #tpu.memory_space<vmem>>, vector<1x128x384xf32>
    %22 = vector.shape_cast %21 : vector<1x128x384xf32> to vector<128x384xf32>
    %cst = arith.constant dense<0.000000e+00> : vector<16x384xf32>
    %23 = tpu.matmul %1, %22, %cst {dimension_numbers = #tpu.dot_dimension_numbers<[1], [0], [0], [1], [0, 0, 1, 1], [], []>} : vector<16x128xf32>, vector<128x384xf32>, vector<16x384xf32> -> vector<16x384xf32>
    %c0_9 = arith.constant 0 : index
    %c0_10 = arith.constant 0 : index
    %c0_11 = arith.constant 0 : index
    %24 = vector.load %arg4[%c0_9, %c0_10, %c0_11] : memref<2x1x384xf32, #tpu.memory_space<vmem>>, vector<1x1x384xf32>
    %25 = vector.shape_cast %24 : vector<1x1x384xf32> to vector<1x384xf32>
    %26 = vector.broadcast %25 : vector<1x384xf32> to vector<16x384xf32>
    %27 = arith.addf %23, %26 : vector<16x384xf32>
    %28 = vector.extract_strided_slice %27 {offsets = [0, 0], sizes = [16, 128], strides = [1, 1]} : vector<16x384xf32> to vector<16x128xf32>
    %29 = vector.shape_cast %28 : vector<16x128xf32> to vector<2x8x128xf32>
    %30 = vector.extract_strided_slice %27 {offsets = [0, 128], sizes = [16, 128], strides = [1, 1]} : vector<16x384xf32> to vector<16x128xf32>
    %31 = vector.shape_cast %30 : vector<16x128xf32> to vector<2x8x128xf32>
    %32 = vector.extract_strided_slice %27 {offsets = [0, 256], sizes = [16, 128], strides = [1, 1]} : vector<16x384xf32> to vector<16x128xf32>
    %33 = vector.shape_cast %32 : vector<16x128xf32> to vector<2x8x128xf32>
    %34 = vector.broadcast %10 : vector<1x1x128xf32> to vector<2x8x128xf32>
    %35 = arith.mulf %31, %34 : vector<2x8x128xf32>
    %36 = vector.broadcast %17 : vector<1x1x128xf32> to vector<2x8x128xf32>
    %37 = arith.mulf %31, %36 : vector<2x8x128xf32>
    %38 = tpu.concatenate %35, %37 in 1 : vector<2x8x128xf32>, vector<2x8x128xf32> -> vector<2x16x128xf32>
    %39 = vector.broadcast %10 : vector<1x1x128xf32> to vector<2x8x128xf32>
    %40 = arith.mulf %33, %39 : vector<2x8x128xf32>
    %41 = vector.broadcast %17 : vector<1x1x128xf32> to vector<2x8x128xf32>
    %42 = arith.mulf %33, %41 : vector<2x8x128xf32>
    %43 = tpu.concatenate %40, %42 in 1 : vector<2x8x128xf32>, vector<2x8x128xf32> -> vector<2x16x128xf32>
    "tpu.trace_start"() <{level = 10 : i32, message = "bqd,bkd->bqk"}> : () -> ()
    %cst_12 = arith.constant dense<0.000000e+00> : vector<2x8x16xf32>
    %44 = tpu.matmul %29, %38, %cst_12 {dimension_numbers = #tpu.dot_dimension_numbers<[2], [2], [1], [1], [0, 0, 0, 1, 1, 1], [0], [0]>} : vector<2x8x128xf32>, vector<2x16x128xf32>, vector<2x8x16xf32> -> vector<2x8x16xf32>
    "tpu.trace_stop"() : () -> ()
    %45 = vector.broadcast %2 : vector<2x1x16xf32> to vector<2x8x16xf32>
    %46 = arith.addf %44, %45 : vector<2x8x16xf32>
    %cst_13 = arith.constant -1.000000e+30 : f32
    %47 = vector.shape_cast %20 : vector<1x1x16xi1> to vector<1x1x16xi1>
    %48 = vector.broadcast %47 : vector<1x1x16xi1> to vector<2x8x16xi1>
    %49 = vector.broadcast %cst_13 : f32 to vector<2x8x16xf32>
    %50 = arith.select %48, %46, %49 : vector<2x8x16xi1>, vector<2x8x16xf32>
    %cst_14 = arith.constant dense<0xFF800000> : vector<2x8xf32>
    %51 = vector.multi_reduction <maximumf>, %50, %cst_14 [2] : vector<2x8x16xf32> to vector<2x8xf32>
    %52 = vector.shape_cast %51 : vector<2x8xf32> to vector<2x8x1xf32>
    %cst_15 = arith.constant -1.000000e+30 : f32
    %53 = vector.shape_cast %20 : vector<1x1x16xi1> to vector<1x1x16xi1>
    %54 = vector.broadcast %53 : vector<1x1x16xi1> to vector<2x8x16xi1>
    %55 = vector.broadcast %cst_15 : f32 to vector<2x8x16xf32>
    %56 = arith.select %54, %55, %46 : vector<2x8x16xi1>, vector<2x8x16xf32>
    %cst_16 = arith.constant dense<0xFF800000> : vector<2x8xf32>
    %57 = vector.multi_reduction <maximumf>, %56, %cst_16 [2] : vector<2x8x16xf32> to vector<2x8xf32>
    %58 = vector.shape_cast %57 : vector<2x8xf32> to vector<2x8x1xf32>
    %59 = vector.shape_cast %20 : vector<1x1x16xi1> to vector<1x1x16xi1>
    %60 = vector.broadcast %59 : vector<1x1x16xi1> to vector<2x8x16xi1>
    %61 = vector.shape_cast %52 : vector<2x8x1xf32> to vector<2x8x1xf32>
    %62 = vector.broadcast %61 : vector<2x8x1xf32> to vector<2x8x16xf32>
    %63 = vector.shape_cast %58 : vector<2x8x1xf32> to vector<2x8x1xf32>
    %64 = vector.broadcast %63 : vector<2x8x1xf32> to vector<2x8x16xf32>
    %65 = arith.select %60, %62, %64 : vector<2x8x16xi1>, vector<2x8x16xf32>
    %66 = arith.subf %46, %65 : vector<2x8x16xf32>
    %67 = math.exp %66 : vector<2x8x16xf32>
    %cst_17 = arith.constant 0.000000e+00 : f32
    %68 = vector.shape_cast %20 : vector<1x1x16xi1> to vector<1x1x16xi1>
    %69 = vector.broadcast %68 : vector<1x1x16xi1> to vector<2x8x16xi1>
    %70 = vector.broadcast %cst_17 : f32 to vector<2x8x16xf32>
    %71 = arith.select %69, %67, %70 : vector<2x8x16xi1>, vector<2x8x16xf32>
    %cst_18 = arith.constant dense<0.000000e+00> : vector<2x8xf32>
    %72 = vector.multi_reduction <add>, %71, %cst_18 [2] : vector<2x8x16xf32> to vector<2x8xf32>
    %73 = vector.shape_cast %72 : vector<2x8xf32> to vector<2x8x1xf32>
    %cst_19 = arith.constant 0.000000e+00 : f32
    %74 = vector.shape_cast %20 : vector<1x1x16xi1> to vector<1x1x16xi1>
    %75 = vector.broadcast %74 : vector<1x1x16xi1> to vector<2x8x16xi1>
    %76 = vector.broadcast %cst_19 : f32 to vector<2x8x16xf32>
    %77 = arith.select %75, %76, %67 : vector<2x8x16xi1>, vector<2x8x16xf32>
    %cst_20 = arith.constant dense<0.000000e+00> : vector<2x8xf32>
    %78 = vector.multi_reduction <add>, %77, %cst_20 [2] : vector<2x8x16xf32> to vector<2x8xf32>
    %79 = vector.shape_cast %78 : vector<2x8xf32> to vector<2x8x1xf32>
    %cst_21 = arith.constant 1.000000e+00 : f32
    %80 = vector.broadcast %cst_21 : f32 to vector<2x8x1xf32>
    %81 = arith.divf %80, %73 : vector<2x8x1xf32>
    %cst_22 = arith.constant 1.000000e+00 : f32
    %82 = vector.broadcast %cst_22 : f32 to vector<2x8x1xf32>
    %83 = arith.divf %82, %79 : vector<2x8x1xf32>
    %84 = vector.shape_cast %20 : vector<1x1x16xi1> to vector<1x1x16xi1>
    %85 = vector.broadcast %84 : vector<1x1x16xi1> to vector<2x8x16xi1>
    %86 = vector.shape_cast %81 : vector<2x8x1xf32> to vector<2x8x1xf32>
    %87 = vector.broadcast %86 : vector<2x8x1xf32> to vector<2x8x16xf32>
    %88 = vector.shape_cast %83 : vector<2x8x1xf32> to vector<2x8x1xf32>
    %89 = vector.broadcast %88 : vector<2x8x1xf32> to vector<2x8x16xf32>
    %90 = arith.select %85, %87, %89 : vector<2x8x16xi1>, vector<2x8x16xf32>
    %91 = arith.mulf %67, %90 : vector<2x8x16xf32>
    %c0_23 = arith.constant 0 : index
    %c0_24 = arith.constant 0 : index
    %c0_25 = arith.constant 0 : index
    %92 = vector.load %arg19[%c0_23, %c0_24, %c0_25] : memref<2x8x16xf32, #tpu.memory_space<vmem>>, vector<2x8x16xf32>
    tpu.vector_store %arg19[%c0_23, %c0_24, %c0_25], %91 {strides = array<i32>} : memref<2x8x16xf32, #tpu.memory_space<vmem>>, vector<2x8x16xf32>,
    "tpu.trace_start"() <{level = 10 : i32, message = "bqk,bkd->bqd"}> : () -> ()
    %cst_26 = arith.constant dense<0.000000e+00> : vector<2x8x128xf32>
    %93 = tpu.matmul %91, %43, %cst_26 {dimension_numbers = #tpu.dot_dimension_numbers<[2], [1], [1], [2], [0, 0, 0, 1, 1, 2], [0], [0]>} : vector<2x8x16xf32>, vector<2x16x128xf32>, vector<2x8x128xf32> -> vector<2x8x128xf32>
    "tpu.trace_stop"() : () -> ()
    %94 = vector.shape_cast %93 : vector<2x8x128xf32> to vector<16x128xf32>
    %c0_27 = arith.constant 0 : index
    %c0_28 = arith.constant 0 : index
    %c0_29 = arith.constant 0 : index
    %95 = vector.load %arg5[%c0_27, %c0_28, %c0_29] : memref<2x128x128xf32, #tpu.memory_space<vmem>>, vector<1x128x128xf32>
    %96 = vector.shape_cast %95 : vector<1x128x128xf32> to vector<128x128xf32>
    %cst_30 = arith.constant dense<0.000000e+00> : vector<16x128xf32>
    %97 = tpu.matmul %94, %96, %cst_30 {dimension_numbers = #tpu.dot_dimension_numbers<[1], [0], [0], [1], [0, 0, 1, 1], [], []>} : vector<16x128xf32>, vector<128x128xf32>, vector<16x128xf32> -> vector<16x128xf32>
    %c0_31 = arith.constant 0 : index
    %c0_32 = arith.constant 0 : index
    %c0_33 = arith.constant 0 : index
    %98 = vector.load %arg6[%c0_31, %c0_32, %c0_33] : memref<2x1x128xf32, #tpu.memory_space<vmem>>, vector<1x1x128xf32>
    %99 = vector.shape_cast %98 : vector<1x1x128xf32> to vector<1x128xf32>
    %100 = vector.broadcast %99 : vector<1x128xf32> to vector<16x128xf32>
    %101 = arith.addf %97, %100 : vector<16x128xf32>
    %102 = arith.addf %1, %101 : vector<16x128xf32>
    %c0_34 = arith.constant 0 : index
    %c0_35 = arith.constant 0 : index
    %c0_36 = arith.constant 0 : index
    %103 = vector.load %arg7[%c0_34, %c0_35, %c0_36] : memref<2x1x128xf32, #tpu.memory_space<vmem>>, vector<1x1x128xf32>
    %104 = vector.shape_cast %103 : vector<1x1x128xf32> to vector<1x128xf32>
    %c0_37 = arith.constant 0 : index
    %c0_38 = arith.constant 0 : index
    %c0_39 = arith.constant 0 : index
    %105 = vector.load %arg8[%c0_37, %c0_38, %c0_39] : memref<2x1x128xf32, #tpu.memory_space<vmem>>, vector<1x1x128xf32>
    %106 = vector.shape_cast %105 : vector<1x1x128xf32> to vector<1x128xf32>
    %cst_40 = arith.constant dense<0.000000e+00> : vector<16xf32>
    %107 = vector.multi_reduction <add>, %102, %cst_40 [1] : vector<16x128xf32> to vector<16xf32>
    %108 = vector.shape_cast %107 : vector<16xf32> to vector<16x1xf32>
    %cst_41 = arith.constant 1.280000e+02 : f32
    %109 = vector.broadcast %cst_41 : f32 to vector<16x1xf32>
    %110 = arith.divf %108, %109 : vector<16x1xf32>
    %111 = vector.broadcast %110 : vector<16x1xf32> to vector<16x128xf32>
    %112 = arith.subf %102, %111 : vector<16x128xf32>
    %113 = arith.mulf %112, %112 : vector<16x128xf32>
    %cst_42 = arith.constant dense<0.000000e+00> : vector<16xf32>
    %114 = vector.multi_reduction <add>, %113, %cst_42 [1] : vector<16x128xf32> to vector<16xf32>
    %115 = vector.shape_cast %114 : vector<16xf32> to vector<16x1xf32>
    %cst_43 = arith.constant 1.280000e+02 : f32
    %116 = vector.broadcast %cst_43 : f32 to vector<16x1xf32>
    %117 = arith.divf %115, %116 : vector<16x1xf32>
    %118 = vector.broadcast %110 : vector<16x1xf32> to vector<16x128xf32>
    %119 = arith.subf %102, %118 : vector<16x128xf32>
    %cst_44 = arith.constant 9.99999974E-6 : f32
    %120 = vector.broadcast %cst_44 : f32 to vector<16x1xf32>
    %121 = arith.addf %117, %120 : vector<16x1xf32>
    %122 = math.rsqrt %121 : vector<16x1xf32>
    %123 = vector.broadcast %122 : vector<16x1xf32> to vector<16x128xf32>
    %124 = arith.mulf %119, %123 : vector<16x128xf32>
    %125 = vector.broadcast %104 : vector<1x128xf32> to vector<16x128xf32>
    %126 = arith.mulf %124, %125 : vector<16x128xf32>
    %127 = vector.broadcast %106 : vector<1x128xf32> to vector<16x128xf32>
    %128 = arith.addf %126, %127 : vector<16x128xf32>
    %c0_45 = arith.constant 0 : index
    %c0_46 = arith.constant 0 : index
    %c0_47 = arith.constant 0 : index
    %129 = vector.load %arg9[%c0_45, %c0_46, %c0_47] : memref<2x128x128xf32, #tpu.memory_space<vmem>>, vector<1x128x128xf32>
    %130 = vector.shape_cast %129 : vector<1x128x128xf32> to vector<128x128xf32>
    %cst_48 = arith.constant dense<0.000000e+00> : vector<16x128xf32>
    %131 = tpu.matmul %128, %130, %cst_48 {dimension_numbers = #tpu.dot_dimension_numbers<[1], [0], [0], [1], [0, 0, 1, 1], [], []>} : vector<16x128xf32>, vector<128x128xf32>, vector<16x128xf32> -> vector<16x128xf32>
    %c0_49 = arith.constant 0 : index
    %c0_50 = arith.constant 0 : index
    %c0_51 = arith.constant 0 : index
    %132 = vector.load %arg10[%c0_49, %c0_50, %c0_51] : memref<2x1x128xf32, #tpu.memory_space<vmem>>, vector<1x1x128xf32>
    %133 = vector.shape_cast %132 : vector<1x1x128xf32> to vector<1x128xf32>
    %134 = vector.broadcast %133 : vector<1x128xf32> to vector<16x128xf32>
    %135 = arith.addf %131, %134 : vector<16x128xf32>
    %cst_52 = arith.constant 0.000000e+00 : f32
    %136 = vector.broadcast %cst_52 : f32 to vector<16x128xf32>
    %137 = arith.maximumf %135, %136 : vector<16x128xf32>
    %c0_53 = arith.constant 0 : index
    %c0_54 = arith.constant 0 : index
    %c0_55 = arith.constant 0 : index
    %138 = vector.load %arg11[%c0_53, %c0_54, %c0_55] : memref<2x128x128xf32, #tpu.memory_space<vmem>>, vector<1x128x128xf32>
    %139 = vector.shape_cast %138 : vector<1x128x128xf32> to vector<128x128xf32>
    %cst_56 = arith.constant dense<0.000000e+00> : vector<16x128xf32>
    %140 = tpu.matmul %137, %139, %cst_56 {dimension_numbers = #tpu.dot_dimension_numbers<[1], [0], [0], [1], [0, 0, 1, 1], [], []>} : vector<16x128xf32>, vector<128x128xf32>, vector<16x128xf32> -> vector<16x128xf32>
    %c0_57 = arith.constant 0 : index
    %c0_58 = arith.constant 0 : index
    %c0_59 = arith.constant 0 : index
    %141 = vector.load %arg12[%c0_57, %c0_58, %c0_59] : memref<2x1x128xf32, #tpu.memory_space<vmem>>, vector<1x1x128xf32>
    %142 = vector.shape_cast %141 : vector<1x1x128xf32> to vector<1x128xf32>
    %143 = vector.broadcast %142 : vector<1x128xf32> to vector<16x128xf32>
    %144 = arith.addf %140, %143 : vector<16x128xf32>
    %145 = arith.addf %128, %144 : vector<16x128xf32>
    %c0_60 = arith.constant 0 : index
    %c0_61 = arith.constant 0 : index
    %c0_62 = arith.constant 0 : index
    %146 = vector.load %arg13[%c0_60, %c0_61, %c0_62] : memref<2x1x128xf32, #tpu.memory_space<vmem>>, vector<1x1x128xf32>
    %147 = vector.shape_cast %146 : vector<1x1x128xf32> to vector<1x128xf32>
    %c0_63 = arith.constant 0 : index
    %c0_64 = arith.constant 0 : index
    %c0_65 = arith.constant 0 : index
    %148 = vector.load %arg14[%c0_63, %c0_64, %c0_65] : memref<2x1x128xf32, #tpu.memory_space<vmem>>, vector<1x1x128xf32>
    %149 = vector.shape_cast %148 : vector<1x1x128xf32> to vector<1x128xf32>
    %cst_66 = arith.constant dense<0.000000e+00> : vector<16xf32>
    %150 = vector.multi_reduction <add>, %145, %cst_66 [1] : vector<16x128xf32> to vector<16xf32>
    %151 = vector.shape_cast %150 : vector<16xf32> to vector<16x1xf32>
    %cst_67 = arith.constant 1.280000e+02 : f32
    %152 = vector.broadcast %cst_67 : f32 to vector<16x1xf32>
    %153 = arith.divf %151, %152 : vector<16x1xf32>
    %154 = vector.broadcast %153 : vector<16x1xf32> to vector<16x128xf32>
    %155 = arith.subf %145, %154 : vector<16x128xf32>
    %156 = arith.mulf %155, %155 : vector<16x128xf32>
    %cst_68 = arith.constant dense<0.000000e+00> : vector<16xf32>
    %157 = vector.multi_reduction <add>, %156, %cst_68 [1] : vector<16x128xf32> to vector<16xf32>
    %158 = vector.shape_cast %157 : vector<16xf32> to vector<16x1xf32>
    %cst_69 = arith.constant 1.280000e+02 : f32
    %159 = vector.broadcast %cst_69 : f32 to vector<16x1xf32>
    %160 = arith.divf %158, %159 : vector<16x1xf32>
    %161 = vector.broadcast %153 : vector<16x1xf32> to vector<16x128xf32>
    %162 = arith.subf %145, %161 : vector<16x128xf32>
    %cst_70 = arith.constant 9.99999974E-6 : f32
    %163 = vector.broadcast %cst_70 : f32 to vector<16x1xf32>
    %164 = arith.addf %160, %163 : vector<16x1xf32>
    %165 = math.rsqrt %164 : vector<16x1xf32>
    %166 = vector.broadcast %165 : vector<16x1xf32> to vector<16x128xf32>
    %167 = arith.mulf %162, %166 : vector<16x128xf32>
    %168 = vector.broadcast %147 : vector<1x128xf32> to vector<16x128xf32>
    %169 = arith.mulf %167, %168 : vector<16x128xf32>
    %170 = vector.broadcast %149 : vector<1x128xf32> to vector<16x128xf32>
    %171 = arith.addf %169, %170 : vector<16x128xf32>
    %c1 = arith.constant 1 : index
    %c0_71 = arith.constant 0 : index
    %c0_72 = arith.constant 0 : index
    %172 = vector.load %arg3[%c1, %c0_71, %c0_72] : memref<2x128x384xf32, #tpu.memory_space<vmem>>, vector<1x128x384xf32>
    %173 = vector.shape_cast %172 : vector<1x128x384xf32> to vector<128x384xf32>
    %cst_73 = arith.constant dense<0.000000e+00> : vector<16x384xf32>
    %174 = tpu.matmul %171, %173, %cst_73 {dimension_numbers = #tpu.dot_dimension_numbers<[1], [0], [0], [1], [0, 0, 1, 1], [], []>} : vector<16x128xf32>, vector<128x384xf32>, vector<16x384xf32> -> vector<16x384xf32>
    %c1_74 = arith.constant 1 : index
    %c0_75 = arith.constant 0 : index
    %c0_76 = arith.constant 0 : index
    %175 = vector.load %arg4[%c1_74, %c0_75, %c0_76] : memref<2x1x384xf32, #tpu.memory_space<vmem>>, vector<1x1x384xf32>
    %176 = vector.shape_cast %175 : vector<1x1x384xf32> to vector<1x384xf32>
    %177 = vector.broadcast %176 : vector<1x384xf32> to vector<16x384xf32>
    %178 = arith.addf %174, %177 : vector<16x384xf32>
    %179 = vector.extract_strided_slice %178 {offsets = [0, 0], sizes = [16, 128], strides = [1, 1]} : vector<16x384xf32> to vector<16x128xf32>
    %180 = vector.shape_cast %179 : vector<16x128xf32> to vector<2x8x128xf32>
    %181 = vector.extract_strided_slice %178 {offsets = [0, 128], sizes = [16, 128], strides = [1, 1]} : vector<16x384xf32> to vector<16x128xf32>
    %182 = vector.shape_cast %181 : vector<16x128xf32> to vector<2x8x128xf32>
    %183 = vector.extract_strided_slice %178 {offsets = [0, 256], sizes = [16, 128], strides = [1, 1]} : vector<16x384xf32> to vector<16x128xf32>
    %184 = vector.shape_cast %183 : vector<16x128xf32> to vector<2x8x128xf32>
    %185 = vector.broadcast %10 : vector<1x1x128xf32> to vector<2x8x128xf32>
    %186 = arith.mulf %182, %185 : vector<2x8x128xf32>
    %187 = vector.broadcast %17 : vector<1x1x128xf32> to vector<2x8x128xf32>
    %188 = arith.mulf %182, %187 : vector<2x8x128xf32>
    %189 = tpu.concatenate %186, %188 in 1 : vector<2x8x128xf32>, vector<2x8x128xf32> -> vector<2x16x128xf32>
    %190 = vector.broadcast %10 : vector<1x1x128xf32> to vector<2x8x128xf32>
    %191 = arith.mulf %184, %190 : vector<2x8x128xf32>
    %192 = vector.broadcast %17 : vector<1x1x128xf32> to vector<2x8x128xf32>
    %193 = arith.mulf %184, %192 : vector<2x8x128xf32>
    %194 = tpu.concatenate %191, %193 in 1 : vector<2x8x128xf32>, vector<2x8x128xf32> -> vector<2x16x128xf32>
    "tpu.trace_start"() <{level = 10 : i32, message = "bqd,bkd->bqk"}> : () -> ()
    %cst_77 = arith.constant dense<0.000000e+00> : vector<2x8x16xf32>
    %195 = tpu.matmul %180, %189, %cst_77 {dimension_numbers = #tpu.dot_dimension_numbers<[2], [2], [1], [1], [0, 0, 0, 1, 1, 1], [0], [0]>} : vector<2x8x128xf32>, vector<2x16x128xf32>, vector<2x8x16xf32> -> vector<2x8x16xf32>
    "tpu.trace_stop"() : () -> ()
    %196 = vector.broadcast %2 : vector<2x1x16xf32> to vector<2x8x16xf32>
    %197 = arith.addf %195, %196 : vector<2x8x16xf32>
    %cst_78 = arith.constant -1.000000e+30 : f32
    %198 = vector.shape_cast %20 : vector<1x1x16xi1> to vector<1x1x16xi1>
    %199 = vector.broadcast %198 : vector<1x1x16xi1> to vector<2x8x16xi1>
    %200 = vector.broadcast %cst_78 : f32 to vector<2x8x16xf32>
    %201 = arith.select %199, %197, %200 : vector<2x8x16xi1>, vector<2x8x16xf32>
    %cst_79 = arith.constant dense<0xFF800000> : vector<2x8xf32>
    %202 = vector.multi_reduction <maximumf>, %201, %cst_79 [2] : vector<2x8x16xf32> to vector<2x8xf32>
    %203 = vector.shape_cast %202 : vector<2x8xf32> to vector<2x8x1xf32>
    %cst_80 = arith.constant -1.000000e+30 : f32
    %204 = vector.shape_cast %20 : vector<1x1x16xi1> to vector<1x1x16xi1>
    %205 = vector.broadcast %204 : vector<1x1x16xi1> to vector<2x8x16xi1>
    %206 = vector.broadcast %cst_80 : f32 to vector<2x8x16xf32>
    %207 = arith.select %205, %206, %197 : vector<2x8x16xi1>, vector<2x8x16xf32>
    %cst_81 = arith.constant dense<0xFF800000> : vector<2x8xf32>
    %208 = vector.multi_reduction <maximumf>, %207, %cst_81 [2] : vector<2x8x16xf32> to vector<2x8xf32>
    %209 = vector.shape_cast %208 : vector<2x8xf32> to vector<2x8x1xf32>
    %210 = vector.shape_cast %20 : vector<1x1x16xi1> to vector<1x1x16xi1>
    %211 = vector.broadcast %210 : vector<1x1x16xi1> to vector<2x8x16xi1>
    %212 = vector.shape_cast %203 : vector<2x8x1xf32> to vector<2x8x1xf32>
    %213 = vector.broadcast %212 : vector<2x8x1xf32> to vector<2x8x16xf32>
    %214 = vector.shape_cast %209 : vector<2x8x1xf32> to vector<2x8x1xf32>
    %215 = vector.broadcast %214 : vector<2x8x1xf32> to vector<2x8x16xf32>
    %216 = arith.select %211, %213, %215 : vector<2x8x16xi1>, vector<2x8x16xf32>
    %217 = arith.subf %197, %216 : vector<2x8x16xf32>
    %218 = math.exp %217 : vector<2x8x16xf32>
    %cst_82 = arith.constant 0.000000e+00 : f32
    %219 = vector.shape_cast %20 : vector<1x1x16xi1> to vector<1x1x16xi1>
    %220 = vector.broadcast %219 : vector<1x1x16xi1> to vector<2x8x16xi1>
    %221 = vector.broadcast %cst_82 : f32 to vector<2x8x16xf32>
    %222 = arith.select %220, %218, %221 : vector<2x8x16xi1>, vector<2x8x16xf32>
    %cst_83 = arith.constant dense<0.000000e+00> : vector<2x8xf32>
    %223 = vector.multi_reduction <add>, %222, %cst_83 [2] : vector<2x8x16xf32> to vector<2x8xf32>
    %224 = vector.shape_cast %223 : vector<2x8xf32> to vector<2x8x1xf32>
    %cst_84 = arith.constant 0.000000e+00 : f32
    %225 = vector.shape_cast %20 : vector<1x1x16xi1> to vector<1x1x16xi1>
    %226 = vector.broadcast %225 : vector<1x1x16xi1> to vector<2x8x16xi1>
    %227 = vector.broadcast %cst_84 : f32 to vector<2x8x16xf32>
    %228 = arith.select %226, %227, %218 : vector<2x8x16xi1>, vector<2x8x16xf32>
    %cst_85 = arith.constant dense<0.000000e+00> : vector<2x8xf32>
    %229 = vector.multi_reduction <add>, %228, %cst_85 [2] : vector<2x8x16xf32> to vector<2x8xf32>
    %230 = vector.shape_cast %229 : vector<2x8xf32> to vector<2x8x1xf32>
    %cst_86 = arith.constant 1.000000e+00 : f32
    %231 = vector.broadcast %cst_86 : f32 to vector<2x8x1xf32>
    %232 = arith.divf %231, %224 : vector<2x8x1xf32>
    %cst_87 = arith.constant 1.000000e+00 : f32
    %233 = vector.broadcast %cst_87 : f32 to vector<2x8x1xf32>
    %234 = arith.divf %233, %230 : vector<2x8x1xf32>
    %235 = vector.shape_cast %20 : vector<1x1x16xi1> to vector<1x1x16xi1>
    %236 = vector.broadcast %235 : vector<1x1x16xi1> to vector<2x8x16xi1>
    %237 = vector.shape_cast %232 : vector<2x8x1xf32> to vector<2x8x1xf32>
    %238 = vector.broadcast %237 : vector<2x8x1xf32> to vector<2x8x16xf32>
    %239 = vector.shape_cast %234 : vector<2x8x1xf32> to vector<2x8x1xf32>
    %240 = vector.broadcast %239 : vector<2x8x1xf32> to vector<2x8x16xf32>
    %241 = arith.select %236, %238, %240 : vector<2x8x16xi1>, vector<2x8x16xf32>
    %242 = arith.mulf %218, %241 : vector<2x8x16xf32>
    %c0_88 = arith.constant 0 : index
    %c0_89 = arith.constant 0 : index
    %c0_90 = arith.constant 0 : index
    %243 = vector.load %arg20[%c0_88, %c0_89, %c0_90] : memref<2x8x16xf32, #tpu.memory_space<vmem>>, vector<2x8x16xf32>
    tpu.vector_store %arg20[%c0_88, %c0_89, %c0_90], %242 {strides = array<i32>} : memref<2x8x16xf32, #tpu.memory_space<vmem>>, vector<2x8x16xf32>,
    "tpu.trace_start"() <{level = 10 : i32, message = "bqk,bkd->bqd"}> : () -> ()
    %cst_91 = arith.constant dense<0.000000e+00> : vector<2x8x128xf32>
    %244 = tpu.matmul %242, %194, %cst_91 {dimension_numbers = #tpu.dot_dimension_numbers<[2], [1], [1], [2], [0, 0, 0, 1, 1, 2], [0], [0]>} : vector<2x8x16xf32>, vector<2x16x128xf32>, vector<2x8x128xf32> -> vector<2x8x128xf32>
    "tpu.trace_stop"() : () -> ()
    %245 = vector.shape_cast %244 : vector<2x8x128xf32> to vector<16x128xf32>
    %c1_92 = arith.constant 1 : index
    %c0_93 = arith.constant 0 : index
    %c0_94 = arith.constant 0 : index
    %246 = vector.load %arg5[%c1_92, %c0_93, %c0_94] : memref<2x128x128xf32, #tpu.memory_space<vmem>>, vector<1x128x128xf32>
    %247 = vector.shape_cast %246 : vector<1x128x128xf32> to vector<128x128xf32>
    %cst_95 = arith.constant dense<0.000000e+00> : vector<16x128xf32>
    %248 = tpu.matmul %245, %247, %cst_95 {dimension_numbers = #tpu.dot_dimension_numbers<[1], [0], [0], [1], [0, 0, 1, 1], [], []>} : vector<16x128xf32>, vector<128x128xf32>, vector<16x128xf32> -> vector<16x128xf32>
    %c1_96 = arith.constant 1 : index
    %c0_97 = arith.constant 0 : index
    %c0_98 = arith.constant 0 : index
    %249 = vector.load %arg6[%c1_96, %c0_97, %c0_98] : memref<2x1x128xf32, #tpu.memory_space<vmem>>, vector<1x1x128xf32>
    %250 = vector.shape_cast %249 : vector<1x1x128xf32> to vector<1x128xf32>
    %251 = vector.broadcast %250 : vector<1x128xf32> to vector<16x128xf32>
    %252 = arith.addf %248, %251 : vector<16x128xf32>
    %253 = arith.addf %171, %252 : vector<16x128xf32>
    %c1_99 = arith.constant 1 : index
    %c0_100 = arith.constant 0 : index
    %c0_101 = arith.constant 0 : index
    %254 = vector.load %arg7[%c1_99, %c0_100, %c0_101] : memref<2x1x128xf32, #tpu.memory_space<vmem>>, vector<1x1x128xf32>
    %255 = vector.shape_cast %254 : vector<1x1x128xf32> to vector<1x128xf32>
    %c1_102 = arith.constant 1 : index
    %c0_103 = arith.constant 0 : index
    %c0_104 = arith.constant 0 : index
    %256 = vector.load %arg8[%c1_102, %c0_103, %c0_104] : memref<2x1x128xf32, #tpu.memory_space<vmem>>, vector<1x1x128xf32>
    %257 = vector.shape_cast %256 : vector<1x1x128xf32> to vector<1x128xf32>
    %cst_105 = arith.constant dense<0.000000e+00> : vector<16xf32>
    %258 = vector.multi_reduction <add>, %253, %cst_105 [1] : vector<16x128xf32> to vector<16xf32>
    %259 = vector.shape_cast %258 : vector<16xf32> to vector<16x1xf32>
    %cst_106 = arith.constant 1.280000e+02 : f32
    %260 = vector.broadcast %cst_106 : f32 to vector<16x1xf32>
    %261 = arith.divf %259, %260 : vector<16x1xf32>
    %262 = vector.broadcast %261 : vector<16x1xf32> to vector<16x128xf32>
    %263 = arith.subf %253, %262 : vector<16x128xf32>
    %264 = arith.mulf %263, %263 : vector<16x128xf32>
    %cst_107 = arith.constant dense<0.000000e+00> : vector<16xf32>
    %265 = vector.multi_reduction <add>, %264, %cst_107 [1] : vector<16x128xf32> to vector<16xf32>
    %266 = vector.shape_cast %265 : vector<16xf32> to vector<16x1xf32>
    %cst_108 = arith.constant 1.280000e+02 : f32
    %267 = vector.broadcast %cst_108 : f32 to vector<16x1xf32>
    %268 = arith.divf %266, %267 : vector<16x1xf32>
    %269 = vector.broadcast %261 : vector<16x1xf32> to vector<16x128xf32>
    %270 = arith.subf %253, %269 : vector<16x128xf32>
    %cst_109 = arith.constant 9.99999974E-6 : f32
    %271 = vector.broadcast %cst_109 : f32 to vector<16x1xf32>
    %272 = arith.addf %268, %271 : vector<16x1xf32>
    %273 = math.rsqrt %272 : vector<16x1xf32>
    %274 = vector.broadcast %273 : vector<16x1xf32> to vector<16x128xf32>
    %275 = arith.mulf %270, %274 : vector<16x128xf32>
    %276 = vector.broadcast %255 : vector<1x128xf32> to vector<16x128xf32>
    %277 = arith.mulf %275, %276 : vector<16x128xf32>
    %278 = vector.broadcast %257 : vector<1x128xf32> to vector<16x128xf32>
    %279 = arith.addf %277, %278 : vector<16x128xf32>
    %c1_110 = arith.constant 1 : index
    %c0_111 = arith.constant 0 : index
    %c0_112 = arith.constant 0 : index
    %280 = vector.load %arg9[%c1_110, %c0_111, %c0_112] : memref<2x128x128xf32, #tpu.memory_space<vmem>>, vector<1x128x128xf32>
    %281 = vector.shape_cast %280 : vector<1x128x128xf32> to vector<128x128xf32>
    %cst_113 = arith.constant dense<0.000000e+00> : vector<16x128xf32>
    %282 = tpu.matmul %279, %281, %cst_113 {dimension_numbers = #tpu.dot_dimension_numbers<[1], [0], [0], [1], [0, 0, 1, 1], [], []>} : vector<16x128xf32>, vector<128x128xf32>, vector<16x128xf32> -> vector<16x128xf32>
    %c1_114 = arith.constant 1 : index
    %c0_115 = arith.constant 0 : index
    %c0_116 = arith.constant 0 : index
    %283 = vector.load %arg10[%c1_114, %c0_115, %c0_116] : memref<2x1x128xf32, #tpu.memory_space<vmem>>, vector<1x1x128xf32>
    %284 = vector.shape_cast %283 : vector<1x1x128xf32> to vector<1x128xf32>
    %285 = vector.broadcast %284 : vector<1x128xf32> to vector<16x128xf32>
    %286 = arith.addf %282, %285 : vector<16x128xf32>
    %cst_117 = arith.constant 0.000000e+00 : f32
    %287 = vector.broadcast %cst_117 : f32 to vector<16x128xf32>
    %288 = arith.maximumf %286, %287 : vector<16x128xf32>
    %c1_118 = arith.constant 1 : index
    %c0_119 = arith.constant 0 : index
    %c0_120 = arith.constant 0 : index
    %289 = vector.load %arg11[%c1_118, %c0_119, %c0_120] : memref<2x128x128xf32, #tpu.memory_space<vmem>>, vector<1x128x128xf32>
    %290 = vector.shape_cast %289 : vector<1x128x128xf32> to vector<128x128xf32>
    %cst_121 = arith.constant dense<0.000000e+00> : vector<16x128xf32>
    %291 = tpu.matmul %288, %290, %cst_121 {dimension_numbers = #tpu.dot_dimension_numbers<[1], [0], [0], [1], [0, 0, 1, 1], [], []>} : vector<16x128xf32>, vector<128x128xf32>, vector<16x128xf32> -> vector<16x128xf32>
    %c1_122 = arith.constant 1 : index
    %c0_123 = arith.constant 0 : index
    %c0_124 = arith.constant 0 : index
    %292 = vector.load %arg12[%c1_122, %c0_123, %c0_124] : memref<2x1x128xf32, #tpu.memory_space<vmem>>, vector<1x1x128xf32>
    %293 = vector.shape_cast %292 : vector<1x1x128xf32> to vector<1x128xf32>
    %294 = vector.broadcast %293 : vector<1x128xf32> to vector<16x128xf32>
    %295 = arith.addf %291, %294 : vector<16x128xf32>
    %296 = arith.addf %279, %295 : vector<16x128xf32>
    %c1_125 = arith.constant 1 : index
    %c0_126 = arith.constant 0 : index
    %c0_127 = arith.constant 0 : index
    %297 = vector.load %arg13[%c1_125, %c0_126, %c0_127] : memref<2x1x128xf32, #tpu.memory_space<vmem>>, vector<1x1x128xf32>
    %298 = vector.shape_cast %297 : vector<1x1x128xf32> to vector<1x128xf32>
    %c1_128 = arith.constant 1 : index
    %c0_129 = arith.constant 0 : index
    %c0_130 = arith.constant 0 : index
    %299 = vector.load %arg14[%c1_128, %c0_129, %c0_130] : memref<2x1x128xf32, #tpu.memory_space<vmem>>, vector<1x1x128xf32>
    %300 = vector.shape_cast %299 : vector<1x1x128xf32> to vector<1x128xf32>
    %cst_131 = arith.constant dense<0.000000e+00> : vector<16xf32>
    %301 = vector.multi_reduction <add>, %296, %cst_131 [1] : vector<16x128xf32> to vector<16xf32>
    %302 = vector.shape_cast %301 : vector<16xf32> to vector<16x1xf32>
    %cst_132 = arith.constant 1.280000e+02 : f32
    %303 = vector.broadcast %cst_132 : f32 to vector<16x1xf32>
    %304 = arith.divf %302, %303 : vector<16x1xf32>
    %305 = vector.broadcast %304 : vector<16x1xf32> to vector<16x128xf32>
    %306 = arith.subf %296, %305 : vector<16x128xf32>
    %307 = arith.mulf %306, %306 : vector<16x128xf32>
    %cst_133 = arith.constant dense<0.000000e+00> : vector<16xf32>
    %308 = vector.multi_reduction <add>, %307, %cst_133 [1] : vector<16x128xf32> to vector<16xf32>
    %309 = vector.shape_cast %308 : vector<16xf32> to vector<16x1xf32>
    %cst_134 = arith.constant 1.280000e+02 : f32
    %310 = vector.broadcast %cst_134 : f32 to vector<16x1xf32>
    %311 = arith.divf %309, %310 : vector<16x1xf32>
    %312 = vector.broadcast %304 : vector<16x1xf32> to vector<16x128xf32>
    %313 = arith.subf %296, %312 : vector<16x128xf32>
    %cst_135 = arith.constant 9.99999974E-6 : f32
    %314 = vector.broadcast %cst_135 : f32 to vector<16x1xf32>
    %315 = arith.addf %311, %314 : vector<16x1xf32>
    %316 = math.rsqrt %315 : vector<16x1xf32>
    %317 = vector.broadcast %316 : vector<16x1xf32> to vector<16x128xf32>
    %318 = arith.mulf %313, %317 : vector<16x128xf32>
    %319 = vector.broadcast %298 : vector<1x128xf32> to vector<16x128xf32>
    %320 = arith.mulf %318, %319 : vector<16x128xf32>
    %321 = vector.broadcast %300 : vector<1x128xf32> to vector<16x128xf32>
    %322 = arith.addf %320, %321 : vector<16x128xf32>
    %323 = vector.shape_cast %322 : vector<16x128xf32> to vector<2x8x128xf32>
    %c0_136 = arith.constant 0 : index
    %c0_137 = arith.constant 0 : index
    %c0_138 = arith.constant 0 : index
    %324 = vector.load %arg17[%c0_136, %c0_137, %c0_138] : memref<2x8x128xf32, #tpu.memory_space<vmem>>, vector<2x8x128xf32>
    tpu.vector_store %arg17[%c0_136, %c0_137, %c0_138], %323 {strides = array<i32>} : memref<2x8x128xf32, #tpu.memory_space<vmem>>, vector<2x8x128xf32>,
    %c0_139 = arith.constant 0 : index
    %c0_140 = arith.constant 0 : index
    %c0_141 = arith.constant 0 : index
    %325 = vector.load %arg15[%c0_139, %c0_140, %c0_141] : memref<1x1x128xf32, #tpu.memory_space<vmem>>, vector<1x1x128xf32>
    %326 = vector.broadcast %325 : vector<1x1x128xf32> to vector<2x8x128xf32>
    %327 = arith.mulf %323, %326 : vector<2x8x128xf32>
    %cst_142 = arith.constant dense<0.000000e+00> : vector<2x8xf32>
    %328 = vector.multi_reduction <add>, %327, %cst_142 [2] : vector<2x8x128xf32> to vector<2x8xf32>
    %c0_143 = arith.constant 0 : index
    %c0_144 = arith.constant 0 : index
    %329 = vector.load %arg16[%c0_143, %c0_144] : memref<1x1xf32, #tpu.memory_space<vmem>>, vector<1x1xf32>
    %330 = vector.broadcast %329 : vector<1x1xf32> to vector<2x8xf32>
    %331 = arith.addf %328, %330 : vector<2x8xf32>
    %c0_145 = arith.constant 0 : index
    %c0_146 = arith.constant 0 : index
    %332 = vector.load %arg18[%c0_145, %c0_146] : memref<2x8xf32, #tpu.memory_space<vmem>>, vector<2x8xf32>
    tpu.vector_store %arg18[%c0_145, %c0_146], %331 {strides = array<i32>} : memref<2x8xf32, #tpu.memory_space<vmem>>, vector<2x8xf32>,
    return
  }
  func.func @transform_0(%arg0: i32) -> (i32, i32, i32) {
    %c0_i32 = arith.constant 0 : i32
    %c0_i32_0 = arith.constant 0 : i32
    %c0_i32_1 = arith.constant 0 : i32
    return %arg0, %c0_i32, %c0_i32_0 : i32, i32, i32
  }
  func.func @transform_1(%arg0: i32) -> (i32, i32, i32) {
    %c0_i32 = arith.constant 0 : i32
    %c0_i32_0 = arith.constant 0 : i32
    %c0_i32_1 = arith.constant 0 : i32
    return %arg0, %c0_i32, %c0_i32_0 : i32, i32, i32
  }
  func.func @transform_2(%arg0: i32) -> (i32, i32, i32) {
    %c0_i32 = arith.constant 0 : i32
    %c0_i32_0 = arith.constant 0 : i32
    %c0_i32_1 = arith.constant 0 : i32
    %c0_i32_2 = arith.constant 0 : i32
    return %c0_i32, %c0_i32_0, %c0_i32_1 : i32, i32, i32
  }
  func.func @transform_3(%arg0: i32) -> (i32, i32, i32) {
    %c0_i32 = arith.constant 0 : i32
    %c0_i32_0 = arith.constant 0 : i32
    %c0_i32_1 = arith.constant 0 : i32
    %c0_i32_2 = arith.constant 0 : i32
    return %c0_i32, %c0_i32_0, %c0_i32_1 : i32, i32, i32
  }
  func.func @transform_4(%arg0: i32) -> (i32, i32, i32) {
    %c0_i32 = arith.constant 0 : i32
    %c0_i32_0 = arith.constant 0 : i32
    %c0_i32_1 = arith.constant 0 : i32
    %c0_i32_2 = arith.constant 0 : i32
    return %c0_i32, %c0_i32_0, %c0_i32_1 : i32, i32, i32
  }
  func.func @transform_5(%arg0: i32) -> (i32, i32, i32) {
    %c0_i32 = arith.constant 0 : i32
    %c0_i32_0 = arith.constant 0 : i32
    %c0_i32_1 = arith.constant 0 : i32
    %c0_i32_2 = arith.constant 0 : i32
    return %c0_i32, %c0_i32_0, %c0_i32_1 : i32, i32, i32
  }
  func.func @transform_6(%arg0: i32) -> (i32, i32, i32) {
    %c0_i32 = arith.constant 0 : i32
    %c0_i32_0 = arith.constant 0 : i32
    %c0_i32_1 = arith.constant 0 : i32
    %c0_i32_2 = arith.constant 0 : i32
    return %c0_i32, %c0_i32_0, %c0_i32_1 : i32, i32, i32
  }
  func.func @transform_7(%arg0: i32) -> (i32, i32, i32) {
    %c0_i32 = arith.constant 0 : i32
    %c0_i32_0 = arith.constant 0 : i32
    %c0_i32_1 = arith.constant 0 : i32
    %c0_i32_2 = arith.constant 0 : i32
    return %c0_i32, %c0_i32_0, %c0_i32_1 : i32, i32, i32
  }
  func.func @transform_8(%arg0: i32) -> (i32, i32, i32) {
    %c0_i32 = arith.constant 0 : i32
    %c0_i32_0 = arith.constant 0 : i32
    %c0_i32_1 = arith.constant 0 : i32
    %c0_i32_2 = arith.constant 0 : i32
    return %c0_i32, %c0_i32_0, %c0_i32_1 : i32, i32, i32
  }
  func.func @transform_9(%arg0: i32) -> (i32, i32, i32) {
    %c0_i32 = arith.constant 0 : i32
    %c0_i32_0 = arith.constant 0 : i32
    %c0_i32_1 = arith.constant 0 : i32
    %c0_i32_2 = arith.constant 0 : i32
    return %c0_i32, %c0_i32_0, %c0_i32_1 : i32, i32, i32
  }
  func.func @transform_10(%arg0: i32) -> (i32, i32, i32) {
    %c0_i32 = arith.constant 0 : i32
    %c0_i32_0 = arith.constant 0 : i32
    %c0_i32_1 = arith.constant 0 : i32
    %c0_i32_2 = arith.constant 0 : i32
    return %c0_i32, %c0_i32_0, %c0_i32_1 : i32, i32, i32
  }
  func.func @transform_11(%arg0: i32) -> (i32, i32, i32) {
    %c0_i32 = arith.constant 0 : i32
    %c0_i32_0 = arith.constant 0 : i32
    %c0_i32_1 = arith.constant 0 : i32
    %c0_i32_2 = arith.constant 0 : i32
    return %c0_i32, %c0_i32_0, %c0_i32_1 : i32, i32, i32
  }
  func.func @transform_12(%arg0: i32) -> (i32, i32, i32) {
    %c0_i32 = arith.constant 0 : i32
    %c0_i32_0 = arith.constant 0 : i32
    %c0_i32_1 = arith.constant 0 : i32
    %c0_i32_2 = arith.constant 0 : i32
    return %c0_i32, %c0_i32_0, %c0_i32_1 : i32, i32, i32
  }
  func.func @transform_13(%arg0: i32) -> (i32, i32, i32) {
    %c0_i32 = arith.constant 0 : i32
    %c0_i32_0 = arith.constant 0 : i32
    %c0_i32_1 = arith.constant 0 : i32
    %c0_i32_2 = arith.constant 0 : i32
    return %c0_i32, %c0_i32_0, %c0_i32_1 : i32, i32, i32
  }
  func.func @transform_14(%arg0: i32) -> (i32, i32, i32) {
    %c0_i32 = arith.constant 0 : i32
    %c0_i32_0 = arith.constant 0 : i32
    %c0_i32_1 = arith.constant 0 : i32
    %c0_i32_2 = arith.constant 0 : i32
    return %c0_i32, %c0_i32_0, %c0_i32_1 : i32, i32, i32
  }
  func.func @transform_15(%arg0: i32) -> (i32, i32) {
    %c0_i32 = arith.constant 0 : i32
    %c0_i32_0 = arith.constant 0 : i32
    %c0_i32_1 = arith.constant 0 : i32
    return %c0_i32, %c0_i32_0 : i32, i32
  }
  func.func @transform_16(%arg0: i32) -> (i32, i32, i32) {
    %c0_i32 = arith.constant 0 : i32
    %c0_i32_0 = arith.constant 0 : i32
    %c0_i32_1 = arith.constant 0 : i32
    return %arg0, %c0_i32, %c0_i32_0 : i32, i32, i32
  }
  func.func @transform_17(%arg0: i32) -> (i32, i32) {
    %c0_i32 = arith.constant 0 : i32
    %c0_i32_0 = arith.constant 0 : i32
    return %arg0, %c0_i32 : i32, i32
  }
  func.func @transform_18(%arg0: i32) -> (i32, i32, i32) {
    %c0_i32 = arith.constant 0 : i32
    %c0_i32_0 = arith.constant 0 : i32
    %c0_i32_1 = arith.constant 0 : i32
    return %arg0, %c0_i32, %c0_i32_0 : i32, i32, i32
  }
  func.func @transform_19(%arg0: i32) -> (i32, i32, i32) {
    %c0_i32 = arith.constant 0 : i32
    %c0_i32_0 = arith.constant 0 : i32
    %c0_i32_1 = arith.constant 0 : i32
    return %arg0, %c0_i32, %c0_i32_0 : i32, i32, i32
  }
}

</mosaic_0001>

<bundles_post_ra>
// kernel: hoi_net_forward.1
= control target key start
LH: loop header
LB: loop body
LE: loop exit
PB: predicated region body
PF: predicated region fallthrough
CT: control target
= control target key end

     0   :  { %s4092_s0 = inlined_call_operand.vmem [shape: f32[2,8,128], index: 0, kind: input, shape index: {}]   ;;  %s4093_s1 = inlined_call_operand.vmem [shape: f32[2,1,16], index: 1, kind: input, shape index: {}]   ;;  %s4094_s2 = inlined_call_operand.hbm [shape: f32[2,128,384], index: 2, kind: input, shape index: {}]   ;;  %s4095_s3 = inlined_call_operand.hbm [shape: f32[2,1,384], index: 3, kind: input, shape index: {}]   ;;  %s4096_s4 = inlined_call_operand.vmem [shape: f32[2,128,128], index: 4, kind: input, shape index: {}]   ;;  %s4097_s5 = inlined_call_operand.vmem [shape: f32[2,1,128], index: 5, kind: input, shape index: {}]   ;;  %s4098_s6 = inlined_call_operand.hbm [shape: f32[2,1,128], index: 6, kind: input, shape index: {}]   ;;  %s4099_s7 = inlined_call_operand.hbm [shape: f32[2,1,128], index: 7, kind: input, shape index: {}]   ;;  %s4100_s8 = inlined_call_operand.hbm [shape: f32[2,128,128], index: 8, kind: input, shape index: {}]   ;;  %s4101_s9 = inlined_call_operand.hbm [shape: f32[2,1,128], index: 9, kind: input, shape index: {}]   ;;  %s4102_s10 = inlined_call_operand.hbm [shape: f32[2,128,128], index: 10, kind: input, shape index: {}]   ;;  %s4103_s11 = inlined_call_operand.hbm [shape: f32[2,1,128], index: 11, kind: input, shape index: {}]   ;;  %s4104_s12 = inlined_call_operand.hbm [shape: f32[2,1,128], index: 12, kind: input, shape index: {}]   ;;  %s4105_s13 = inlined_call_operand.hbm [shape: f32[2,1,128], index: 13, kind: input, shape index: {}]   ;;  %s4106_s14 = inlined_call_operand.vmem [shape: f32[1,1,128], index: 14, kind: input, shape index: {}]   ;;  %s4107_s15 = inlined_call_operand.<no memory space> [shape: f32[1,1], index: 15, kind: input, shape index: {}]   ;;  %s4108_s16 = inlined_call_operand.hbm [shape: f32[2,8,128], index: 16, kind: output, shape index: {0}]   ;;  %s4109_s17 = inlined_call_operand.hbm [shape: f32[2,8], index: 17, kind: output, shape index: {1}]   ;;  %s4110_s18 = inlined_call_operand.vmem [shape: f32[2,8,16], index: 18, kind: output, shape index: {2}]   ;;  %s4111_s19 = inlined_call_operand.vmem [shape: f32[2,8,16], index: 19, kind: output, shape index: {3}]  }
   0x1   :  { %4117 = sst [smem:[#allocation31_spill]] %s4092_s0  ;;  %v25_v0 = vstv %s4107_s15 }
   0x2   :  { %4118 = sst [smem:[#allocation32_spill]] %s4093_s1  ;;  %26 = vst [vmem:[#allocation2] sm:$0x1] %v25_v0 }
   0x3   :  { %4119 = sst [smem:[#allocation33_spill]] %s4094_s2 }
   0x4   :  { %4120 = sst [smem:[#allocation34_spill]] %s4095_s3 }
   0x5   :  { %4121 = sst [smem:[#allocation35_spill]] %s4109_s17 }
   0x6   :  { %27 = vsyncpa [#allocation4], 0 }
   0x7   :  { %28 = vsyncpa [#allocation7], 0 }
   0x8   :  { %29 = vsyncpa [#allocation10], 0 }
   0x9   :  { %30 = vsyncpa [#allocation13], 0 }
   0xa   :  { %31 = vsyncpa [#allocation16], 0 }
   0xb   :  { %32 = vsyncpa [#allocation19], 0 }
   0xc   :  { %33 = vsyncpa [#allocation5], 0 }
   0xd   :  { %34 = vsyncpa [#allocation22], 0  ;;  %s3452_s20 = smov [#allocation6]   ;;  %s4122_s2 = sld [smem:[#allocation34_spill]] }
   0xe   :  { %s56_s21 = sshll.u32 %s3452_s20, 4  ;;  %s57_s21 = int_to_ptr.vmem [resolvable:$true] %s56_s21 }
  0x13   :  { %s3172_s23 = scalar_lea.hbm %s4122_s2, 96 }
  0x14   :  { %p3173_p0 = scmp.ne.s32.totalorder %s4122_s2, %s3172_s23  ;;  %p3176_p1 = scmp.lt.u32.totalorder %s3172_s23, %s4122_s2 }
  0x16   :  { %p3178_p2 = pnand %p3176_p1, %p3173_p0 }
  0x18   :  { %3181 = shalt.err (!%p3178_p2)
}
  0x19   :  { %s3182_s26 = scalar_lea.vmem %s57_s21, 96  ;;  %p3187_p4 = scmp.lt.s32.totalorder %s57_s21, %s57_s21 }
  0x1a   :  { %p3183_p3 = scmp.ne.s32.totalorder %s57_s21, %s3182_s26  ;;  %p3188_p5 = scmp.lt.s32.totalorder %s3182_s26, %s3182_s26 }
  0x1c   :  { %p3189_p6 = por %p3188_p5, %p3187_p4 }
  0x1e   :  { %p3190_p7 = pnand %p3189_p6, %p3183_p3 }
  0x20   :  { %3193 = shalt.err (!%p3190_p7)
}
  0x21   :  { %s3453_s27 = smov 48   ;;  %s3454_s28 = smov 3  }
  0x22   :  { %62 = dma.hbm_to_vmem [thread:$0]  %s4122_s2, 96, %s57_s21, [#allocation7], %s3453_s27, %s3453_s27, %s3454_s28  }
  0x23   :  { %s3455_s30 = smov [#allocation9]   ;;  %s3456_s1 = smov [#allocation12]  }
  0x24   :  { %s84_s20 = sshll.u32 %s3455_s30, 4  ;;  %s108_s22 = sshll.u32 %s3456_s1, 4  ;;  %s85_s20 = int_to_ptr.vmem [resolvable:$true] %s84_s20  ;;  %s109_s22 = int_to_ptr.vmem [resolvable:$true] %s108_s22 }
  0x25   :  { %s3194_s25 = scalar_lea.hbm %s4099_s7, 32 }
  0x26   :  { %p3195_p8 = scmp.ne.s32.totalorder %s4099_s7, %s3194_s25  ;;  %p3198_p9 = scmp.lt.u32.totalorder %s3194_s25, %s4099_s7 }
  0x28   :  { %p3200_p10 = pnand %p3198_p9, %p3195_p8 }
  0x2a   :  { %3203 = shalt.err (!%p3200_p10)
}
  0x2b   :  { %s3204_s21 = scalar_lea.vmem %s85_s20, 32  ;;  %p3209_p12 = scmp.lt.s32.totalorder %s85_s20, %s85_s20 }
  0x2c   :  { %p3205_p11 = scmp.ne.s32.totalorder %s85_s20, %s3204_s21  ;;  %p3210_p13 = scmp.lt.s32.totalorder %s3204_s21, %s3204_s21 }
  0x2e   :  { %p3211_p0 = por %p3210_p13, %p3209_p12 }
  0x30   :  { %p3212_p1 = pnand %p3211_p0, %p3205_p11 }
  0x32   :  { %3215 = shalt.err (!%p3212_p1)
}
  0x33   :  { %s3457_s2 = smov 16   ;;  %s3458_s27 = smov 1  }
  0x34   :  { %90 = dma.hbm_to_vmem [thread:$0]  %s4099_s7, 32, %s85_s20, [#allocation10], %s3457_s2, %s3457_s2, %s3458_s27  }
  0x35   :  { %s3216_s30 = scalar_lea.hbm %s4101_s9, 32 }
  0x36   :  { %p3217_p2 = scmp.ne.s32.totalorder %s4101_s9, %s3216_s30  ;;  %p3220_p3 = scmp.lt.u32.totalorder %s3216_s30, %s4101_s9 }
  0x38   :  { %p3222_p4 = pnand %p3220_p3, %p3217_p2 }
  0x3a   :  { %3225 = shalt.err (!%p3222_p4)
}
  0x3b   :  { %s3226_s15 = scalar_lea.vmem %s109_s22, 32  ;;  %p3231_p6 = scmp.lt.s32.totalorder %s109_s22, %s109_s22 }
  0x3c   :  { %p3227_p5 = scmp.ne.s32.totalorder %s109_s22, %s3226_s15  ;;  %p3232_p7 = scmp.lt.s32.totalorder %s3226_s15, %s3226_s15 }
  0x3e   :  { %p3233_p8 = por %p3232_p7, %p3231_p6 }
  0x40   :  { %p3234_p9 = pnand %p3233_p8, %p3227_p5 }
  0x42   :  { %3237 = shalt.err (!%p3234_p9)
}
  0x43   :  { %114 = dma.hbm_to_vmem [thread:$0]  %s4101_s9, 32, %s109_s22, [#allocation13], %s3457_s2, %s3457_s2, %s3458_s27  }
  0x44   :  { %s3459_s3 = smov [#allocation15]   ;;  %s3460_s21 = smov [#allocation3]  }
  0x45   :  { %s132_s26 = sshll.u32 %s3459_s3, 4  ;;  %s44_s28 = sshll.u32 %s3460_s21, 4  ;;  %s133_s26 = int_to_ptr.vmem [resolvable:$true] %s132_s26  ;;  %s45_s28 = int_to_ptr.vmem [resolvable:$true] %s44_s28 }
  0x46   :  { %s3238_s0 = scalar_lea.hbm %s4103_s11, 32 }
  0x47   :  { %p3239_p10 = scmp.ne.s32.totalorder %s4103_s11, %s3238_s0  ;;  %p3242_p11 = scmp.lt.u32.totalorder %s3238_s0, %s4103_s11 }
  0x49   :  { %p3244_p12 = pnand %p3242_p11, %p3239_p10 }
  0x4b   :  { %3247 = shalt.err (!%p3244_p12)
}
  0x4c   :  { %s3248_s9 = scalar_lea.vmem %s133_s26, 32  ;;  %p3253_p0 = scmp.lt.s32.totalorder %s133_s26, %s133_s26 }
  0x4d   :  { %p3249_p13 = scmp.ne.s32.totalorder %s133_s26, %s3248_s9  ;;  %p3254_p1 = scmp.lt.s32.totalorder %s3248_s9, %s3248_s9 }
  0x4f   :  { %p3255_p2 = por %p3254_p1, %p3253_p0 }
  0x51   :  { %p3256_p3 = pnand %p3255_p2, %p3249_p13 }
  0x53   :  { %3259 = shalt.err (!%p3256_p3)
}
  0x54   :  { %138 = dma.hbm_to_vmem [thread:$0]  %s4103_s11, 32, %s133_s26, [#allocation16], %s3457_s2, %s3457_s2, %s3458_s27  }
  0x55   :  { %s4123_s20 = sld [smem:[#allocation33_spill]] }
  0x5b   :  { %s3260_s3 = scalar_lea.hbm %s4123_s20, 12288 }
  0x5c   :  { %p3261_p4 = scmp.ne.s32.totalorder %s4123_s20, %s3260_s3  ;;  %p3264_p5 = scmp.lt.u32.totalorder %s3260_s3, %s4123_s20 }
  0x5e   :  { %p3266_p6 = pnand %p3264_p5, %p3261_p4 }
  0x60   :  { %3269 = shalt.err (!%p3266_p6)
}
  0x61   :  { %s3270_s30 = scalar_lea.vmem %s45_s28, 12288  ;;  %p3275_p8 = scmp.lt.s32.totalorder %s45_s28, %s45_s28 }
  0x62   :  { %p3271_p7 = scmp.ne.s32.totalorder %s45_s28, %s3270_s30  ;;  %p3276_p9 = scmp.lt.s32.totalorder %s3270_s30, %s3270_s30 }
  0x64   :  { %p3277_p10 = por %p3276_p9, %p3275_p8 }
  0x66   :  { %p3278_p11 = pnand %p3277_p10, %p3271_p7 }
  0x68   :  { %3281 = shalt.err (!%p3278_p11)
}
  0x69   :  { %s3461_s11 = smov 384   ;;  %s3462_s26 = smov 24  }
  0x6a   :  { %50 = dma.hbm_to_vmem [thread:$0]  %s4123_s20, 12288, %s45_s28, [#allocation4], %s3461_s11, %s3461_s11, %s3462_s26  }
  0x6b   :  { %s3463_s24 = smov [#allocation8]   ;;  %s3464_s22 = smov [#allocation11]  }
  0x6c   :  { %s72_s9 = sshll.u32 %s3463_s24, 4  ;;  %s96_s25 = sshll.u32 %s3464_s22, 4  ;;  %s73_s9 = int_to_ptr.vmem [resolvable:$true] %s72_s9  ;;  %s97_s25 = int_to_ptr.vmem [resolvable:$true] %s96_s25 }
  0x6d   :  { %s3282_s3 = scalar_lea.hbm %s4098_s6, 32 }
  0x6e   :  { %p3283_p12 = scmp.ne.s32.totalorder %s4098_s6, %s3282_s3  ;;  %p3286_p13 = scmp.lt.u32.totalorder %s3282_s3, %s4098_s6 }
  0x70   :  { %p3288_p0 = pnand %p3286_p13, %p3283_p12 }
  0x72   :  { %3291 = shalt.err (!%p3288_p0)
}
  0x73   :  { %s3292_s28 = scalar_lea.vmem %s73_s9, 32  ;;  %p3297_p2 = scmp.lt.s32.totalorder %s73_s9, %s73_s9 }
  0x74   :  { %p3293_p1 = scmp.ne.s32.totalorder %s73_s9, %s3292_s28  ;;  %p3298_p3 = scmp.lt.s32.totalorder %s3292_s28, %s3292_s28 }
  0x76   :  { %p3299_p4 = por %p3298_p3, %p3297_p2 }
  0x78   :  { %p3300_p5 = pnand %p3299_p4, %p3293_p1 }
  0x7a   :  { %3303 = shalt.err (!%p3300_p5)
}
  0x7b   :  { %78 = dma.hbm_to_vmem [thread:$0]  %s4098_s6, 32, %s73_s9, [#allocation7], %s3457_s2, %s3457_s2, %s3458_s27  }
  0x7c   :  { %s3304_s1 = scalar_lea.hbm %s4100_s8, 4096 }
  0x7d   :  { %p3305_p6 = scmp.ne.s32.totalorder %s4100_s8, %s3304_s1  ;;  %p3308_p7 = scmp.lt.u32.totalorder %s3304_s1, %s4100_s8 }
  0x7f   :  { %p3310_p8 = pnand %p3308_p7, %p3305_p6 }
  0x81   :  { %3313 = shalt.err (!%p3310_p8)
}
  0x82   :  { %s3314_s7 = scalar_lea.vmem %s97_s25, 4096  ;;  %p3319_p10 = scmp.lt.s32.totalorder %s97_s25, %s97_s25 }
  0x83   :  { %p3315_p9 = scmp.ne.s32.totalorder %s97_s25, %s3314_s7  ;;  %p3320_p11 = scmp.lt.s32.totalorder %s3314_s7, %s3314_s7 }
  0x85   :  { %p3321_p12 = por %p3320_p11, %p3319_p10 }
  0x87   :  { %p3322_p13 = pnand %p3321_p12, %p3315_p9 }
  0x89   :  { %3325 = shalt.err (!%p3322_p13)
}
  0x8a   :  { %s3465_s6 = smov 128   ;;  %s3466_s9 = smov 8  }
  0x8b   :  { %102 = dma.hbm_to_vmem [thread:$0]  %s4100_s8, 4096, %s97_s25, [#allocation10], %s3465_s6, %s3465_s6, %s3466_s9  }
  0x8c   :  { %s3467_s29 = smov [#allocation14]   ;;  %s3468_s0 = smov [#allocation17]  }
  0x8d   :  { %s120_s17 = sshll.u32 %s3467_s29, 4  ;;  %s144_s28 = sshll.u32 %s3468_s0, 4  ;;  %s121_s17 = int_to_ptr.vmem [resolvable:$true] %s120_s17  ;;  %s145_s28 = int_to_ptr.vmem [resolvable:$true] %s144_s28 }
  0x8e   :  { %s3326_s11 = scalar_lea.hbm %s4102_s10, 4096 }
  0x8f   :  { %p3327_p0 = scmp.ne.s32.totalorder %s4102_s10, %s3326_s11  ;;  %p3330_p1 = scmp.lt.u32.totalorder %s3326_s11, %s4102_s10 }
  0x91   :  { %p3332_p2 = pnand %p3330_p1, %p3327_p0 }
  0x93   :  { %3335 = shalt.err (!%p3332_p2)
}
  0x94   :  { %s3336_s8 = scalar_lea.vmem %s121_s17, 4096  ;;  %p3341_p4 = scmp.lt.s32.totalorder %s121_s17, %s121_s17 }
  0x95   :  { %p3337_p3 = scmp.ne.s32.totalorder %s121_s17, %s3336_s8  ;;  %p3342_p5 = scmp.lt.s32.totalorder %s3336_s8, %s3336_s8 }
  0x97   :  { %p3343_p6 = por %p3342_p5, %p3341_p4 }
  0x99   :  { %p3344_p7 = pnand %p3343_p6, %p3337_p3 }
  0x9b   :  { %3347 = shalt.err (!%p3344_p7)
}
  0x9c   :  { %126 = dma.hbm_to_vmem [thread:$0]  %s4102_s10, 4096, %s121_s17, [#allocation13], %s3465_s6, %s3465_s6, %s3466_s9  }
  0x9d   :  { %s3348_s3 = scalar_lea.hbm %s4104_s12, 32 }
  0x9e   :  { %p3349_p8 = scmp.ne.s32.totalorder %s4104_s12, %s3348_s3  ;;  %p3352_p9 = scmp.lt.u32.totalorder %s3348_s3, %s4104_s12 }
  0xa0   :  { %p3354_p10 = pnand %p3352_p9, %p3349_p8 }
  0xa2   :  { %3357 = shalt.err (!%p3354_p10)
}
  0xa3   :  { %s3358_s30 = scalar_lea.vmem %s145_s28, 32  ;;  %p3363_p12 = scmp.lt.s32.totalorder %s145_s28, %s145_s28 }
  0xa4   :  { %p3359_p11 = scmp.ne.s32.totalorder %s145_s28, %s3358_s30  ;;  %p3364_p13 = scmp.lt.s32.totalorder %s3358_s30, %s3358_s30 }
  0xa6   :  { %p3365_p0 = por %p3364_p13, %p3363_p12 }
  0xa8   :  { %p3366_p1 = pnand %p3365_p0, %p3359_p11 }
  0xaa   :  { %3369 = shalt.err (!%p3366_p1)
}
  0xab   :  { %150 = dma.hbm_to_vmem [thread:$0]  %s4104_s12, 32, %s145_s28, [#allocation16], %s3457_s2, %s3457_s2, %s3458_s27  }
  0xac   :  { %s3469_s11 = smov [#allocation18]   ;;  %s3370_s24 = scalar_lea.hbm %s4105_s13, 32 }
  0xad   :  { %s156_s26 = sshll.u32 %s3469_s11, 4  ;;  %p3371_p2 = scmp.ne.s32.totalorder %s4105_s13, %s3370_s24  ;;  %s157_s26 = int_to_ptr.vmem [resolvable:$true] %s156_s26 }
  0xae   :  { %p3374_p3 = scmp.lt.u32.totalorder %s3370_s24, %s4105_s13 }
  0xb0   :  { %p3376_p4 = pnand %p3374_p3, %p3371_p2 }
  0xb2   :  { %3379 = shalt.err (!%p3376_p4)
}
  0xb3   :  { %s3380_s7 = scalar_lea.vmem %s157_s26, 32  ;;  %p3385_p6 = scmp.lt.s32.totalorder %s157_s26, %s157_s26 }
  0xb4   :  { %p3381_p5 = scmp.ne.s32.totalorder %s157_s26, %s3380_s7  ;;  %p3386_p7 = scmp.lt.s32.totalorder %s3380_s7, %s3380_s7 }
  0xb6   :  { %p3387_p8 = por %p3386_p7, %p3385_p6 }
  0xb8   :  { %p3388_p9 = pnand %p3387_p8, %p3381_p5 }
  0xba   :  { %3391 = shalt.err (!%p3388_p9)
}
  0xbb   :  { %162 = dma.hbm_to_vmem [thread:$0]  %s4105_s13, 32, %s157_s26, [#allocation19], %s3457_s2, %s3457_s2, %s3458_s27  }
  0xbc   :  { %3436 = dma.done.wait [#allocation4], 12288  }
  0xbd   :  { %3437 = vsyncadd [#allocation4], 4294955008 }
  0xbe   :  { %3438 = dma.done.wait [#allocation7], 128  }
  0xbf   :  { %3439 = vsyncadd [#allocation7], 4294967168 }
  0xc0   :  { %3440 = dma.done.wait [#allocation10], 4128  }
  0xc1   :  { %3441 = vsyncadd [#allocation10], 4294963168 }
  0xc2   :  { %3442 = dma.done.wait [#allocation13], 4128  }
  0xc3   :  { %3443 = vsyncadd [#allocation13], 4294963168 }
  0xc4   :  { %3444 = dma.done.wait [#allocation16], 64  }
  0xc5   :  { %3445 = vsyncadd [#allocation16], 4294967232 }
  0xc6   :  { %3446 = dma.done.wait [#allocation19], 32  }
  0xc7   :  { %3447 = vsyncadd [#allocation19], 4294967264  ;;  %v3470_v1 = vmov 0.0   ;;  %v215_v2 = vld [vmem:[#allocation3 + $0x8] sm:$0xff]  ;;  %v218_v3 = vld [vmem:[#allocation3 + $0x20] sm:$0xff]  ;;  %s4124_s27 = sld [smem:[#allocation31_spill]]  ;;  %v201_v53 = vlaneseq }
  0xc8   :  { %343 = vmatprep.mubr.f32.mxu0 %v3470_v1  ;;  %v214_v4 = vld [vmem:[#allocation3] sm:$0xff]  ;;  %v2763_v5 = vpack.c.bf16 %v218_v3, %v215_v2  ;;  %v217_v6 = vld [vmem:[#allocation3 + $0x18] sm:$0xff]  ;;  %v224_v8 = vld [vmem:[#allocation3 + $0x50] sm:$0xff]  ;;  %v3471_v52 = vmov 0.0|0.0   ;;  %vm3472_vm0 = vmmov 0   ;;  %s4125_s20 = sld [smem:[#allocation32_spill]] }
  0xc9   :  { %v221_v7 = vld [vmem:[#allocation3 + $0x38] sm:$0xff]  ;;  %v2765_v9 = vpack.c.bf16 %v217_v6, %v214_v4  ;;  %v220_v11 = vld [vmem:[#allocation3 + $0x30] sm:$0xff]  ;;  %v223_v12 = vld [vmem:[#allocation3 + $0x48] sm:$0xff]  ;;  %v3741_v54 = vshrl.u32 %v201_v53, 7  ;;  %v3743_v55 = vand.u32 127, %v201_v53  ;;  %vm595_vm4 = vcmask 130048  }
  0xca   :  { %v2767_v10 = vpack.c.bf16 %v224_v8, %v221_v7  ;;  %v227_v13 = vld [vmem:[#allocation3 + $0x68] sm:$0xff]  ;;  %2764 = vmatprep.subr.bf16.mxu0 %v2763_v5  ;;  %v230_v14 = vld [vmem:[#allocation3 + $0x80] sm:$0xff]  ;;  %v2769_v15 = vpack.c.bf16 %v223_v12, %v220_v11  ;;  %v229_v18 = vld [vmem:[#allocation3 + $0x78] sm:$0xff]  ;;  %s3474_s1 = smov [#allocation20]  }
  0xcb   :  { %2766 = vmatpush1.bf16.msra.mxu0 %v2765_v9  ;;  %v2771_v16 = vpack.c.bf16 %v230_v14, %v227_v13  ;;  %v226_v17 = vld [vmem:[#allocation3 + $0x60] sm:$0xff]  ;;  %v233_v19 = vld [vmem:[#allocation3 + $0x98] sm:$0xff]  ;;  %v236_v20 = vld [vmem:[#allocation3 + $0xb0] sm:$0xff]  ;;  %v270_v56 = vsub.s32 1, %v3741_v54  ;;  %vm204_vm1 = vcmp.lt.s32.totalorder %v3743_v55, 64  ;;  %vm208_vm2 = vcmp.ge.s32.totalorder %v3743_v55, 64 }
  0xcc   :  { %2768 = vmatprep.subr.bf16.mxu0 %v2767_v10  ;;  %v2773_v21 = vpack.c.bf16 %v229_v18, %v226_v17  ;;  %v2775_v22 = vpack.c.bf16 %v236_v20, %v233_v19  ;;  %v232_v23 = vld [vmem:[#allocation3 + $0x90] sm:$0xff]  ;;  %v235_v24 = vld [vmem:[#allocation3 + $0xa8] sm:$0xff]  ;;  %v242_v26 = vld [vmem:[#allocation3 + $0xe0] sm:$0xff]  ;;  %v3754_v60 = vsel %vm204_vm1, 1.0, %v3470_v1  ;;  %v3757_v61 = vsel %vm208_vm2, 1.0, %v3470_v1  ;;  %s2179_s23 = sshll.u32 %s3474_s1, 4  ;;  %s2180_s23 = int_to_ptr.vmem [resolvable:$true] %s2179_s23 }
  0xcd   :  { %v239_v25 = vld [vmem:[#allocation3 + $0xc8] sm:$0xff]  ;;  %v3727_v27 = vld [vmem:[%s4124_s27] sm:$0xff]  ;;  %v2777_v28 = vpack.c.bf16 %v235_v24, %v232_v23  ;;  %v248_v33 = vld [vmem:[#allocation3 + $0x110] sm:$0xff]  ;;  %v266_v4 = vsub.s32 0, %v3741_v54  ;;  %vm213_vm3 = vcmp.lt.s32.totalorder %v3743_v55, 8  ;;  %s3392_s24 = scalar_lea.vmem %s2180_s23, 256  ;;  %p3397_p11 = scmp.lt.s32.totalorder %s2180_s23, %s2180_s23 }
  0xce   :  { %2459 = vmatprep.mubr.f32.mxu1 %v3727_v27  ;;  %v2779_v29 = vpack.c.bf16 %v242_v26, %v239_v25  ;;  %v238_v30 = vld [vmem:[#allocation3 + $0xc0] sm:$0xff]  ;;  %v241_v31 = vld [vmem:[#allocation3 + $0xd8] sm:$0xff]  ;;  %v244_v36 = vld [vmem:[#allocation3 + $0xf0] sm:$0xff]  ;;  %p3393_p10 = scmp.ne.s32.totalorder %s2180_s23, %s3392_s24  ;;  %p3398_p12 = scmp.lt.s32.totalorder %s3392_s24, %s3392_s24 }
  0xcf   :  { %2770 = vmatpush1.bf16.msra.mxu0 %v2769_v15  ;;  %v245_v32 = vld [vmem:[#allocation3 + $0xf8] sm:$0xff]  ;;  %v2781_v34 = vpack.c.bf16 %v241_v31, %v238_v30  ;;  %v247_v37 = vld [vmem:[#allocation3 + $0x108] sm:$0xff]  ;;  %v254_v39 = vld [vmem:[#allocation3 + $0x140] sm:$0xff] }
  0xd0   :  { %2772 = vmatprep.subr.bf16.mxu0 %v2771_v16  ;;  %v2783_v35 = vpack.c.bf16 %v248_v33, %v245_v32  ;;  %v251_v38 = vld [vmem:[#allocation3 + $0x128] sm:$0xff]  ;;  %v2785_v40 = vpack.c.bf16 %v247_v37, %v244_v36  ;;  %v250_v42 = vld [vmem:[#allocation3 + $0x120] sm:$0xff]  ;;  %v253_v43 = vld [vmem:[#allocation3 + $0x138] sm:$0xff]  ;;  %p3399_p13 = por %p3398_p12, %p3397_p11 }
  0xd1   :  { %v2787_v41 = vpack.c.bf16 %v254_v39, %v251_v38  ;;  %v257_v44 = vld [vmem:[#allocation3 + $0x158] sm:$0xff]  ;;  %v260_v45 = vld [vmem:[#allocation3 + $0x170] sm:$0xff]  ;;  %v2789_v46 = vpack.c.bf16 %v253_v43, %v250_v42  ;;  %v259_v49 = vld [vmem:[#allocation3 + $0x168] sm:$0xff] }
  0xd2   :  { %v2791_v47 = vpack.c.bf16 %v260_v45, %v257_v44  ;;  %v256_v48 = vld [vmem:[#allocation3 + $0x150] sm:$0xff]  ;;  %v3735_v51 = vld [vmem:[%s4124_s27 + $0x8] sm:$0xff]  ;;  %v3746_v57 = vld [vmem:[#allocation6] sm:$0x7]  ;;  %p3400_p0 = pnand %p3399_p13, %p3393_p10 }
  0xd3   :  { %2774 = vmatpush1.bf16.msra.mxu0 %v2773_v21  ;;  %v2793_v50 = vpack.c.bf16 %v259_v49, %v256_v48  ;;  %v271_v58 = vrot.slane %v3746_v57, %v270_v56  ;;  %v267_v10 = vrot.slane %v3746_v57, %v266_v4  ;;  %v216_v14 = vld [vmem:[#allocation3 + $0x10] sm:$0xff]  ;;  %v219_v15 = vld [vmem:[#allocation3 + $0x28] sm:$0xff]  ;;  %v222_v16 = vld [vmem:[#allocation3 + $0x40] sm:$0xff] }
  0xd4   :  { %2776 = vmatprep.subr.bf16.mxu0 %v2775_v22  ;;  %v2795_v17 = vpack.c.bf16 %v219_v15, %v216_v14  ;;  %v225_v18 = vld [vmem:[#allocation3 + $0x58] sm:$0xff]  ;;  %v228_v20 = vld [vmem:[#allocation3 + $0x70] sm:$0xff]  ;;  %v231_v21 = vld [vmem:[#allocation3 + $0x88] sm:$0xff] }
  0xd5   :  { %v2799_v19 = vpack.c.bf16 %v225_v18, %v222_v16  ;;  %v2803_v22 = vpack.c.bf16 %v231_v21, %v228_v20  ;;  %v234_v23 = vld [vmem:[#allocation3 + $0xa0] sm:$0xff]  ;;  %v237_v24 = vld [vmem:[#allocation3 + $0xb8] sm:$0xff]  ;;  %v240_v26 = vld [vmem:[#allocation3 + $0xd0] sm:$0xff]  ;;  %v274_v21 = vsub.s32 2, %v3741_v54 }
  0xd6   :  { %2796 = vmatprep.subr.bf16.mxu1 %v2795_v17  ;;  %v2807_v25 = vpack.c.bf16 %v237_v24, %v234_v23  ;;  %v246_v30 = vld [vmem:[#allocation3 + $0x100] sm:$0xff]  ;;  %v249_v31 = vld [vmem:[#allocation3 + $0x118] sm:$0xff]  ;;  %v252_v33 = vld [vmem:[#allocation3 + $0x130] sm:$0xff] }
  0xd7   :  { %2778 = vmatpush1.bf16.msra.mxu0 %v2777_v28  ;;  %2798 = vmatpush3.bf16.msra.mxu1 %v2795_v17  ;;  %v243_v28 = vld [vmem:[#allocation3 + $0xe8] sm:$0xff]  ;;  %v2815_v32 = vpack.c.bf16 %v249_v31, %v246_v30  ;;  %v258_v36 = vld [vmem:[#allocation3 + $0x160] sm:$0xff]  ;;  %v261_v37 = vld [vmem:[#allocation3 + $0x178] sm:$0xff]  ;;  %v275_v24 = vrot.slane %v3746_v57, %v274_v21 }
  0xd8   :  { %2780 = vmatprep.subr.bf16.mxu0 %v2779_v29  ;;  %2800 = vmatprep.subr.bf16.mxu1 %v2799_v19  ;;  %v2811_v29 = vpack.c.bf16 %v243_v28, %v240_v26  ;;  %v2823_v38 = vpack.c.bf16 %v261_v37, %v258_v36  ;;  %v3777_v39 = vld [vmem:[%s4125_s20] ss:$0 sm:$0xff] }
  0xd9   :  { %v794_v37 = vld [vmem:[%s4096_s4] sm:$0xff] }
  0xdb   :  { %2782 = vmatpush1.bf16.msra.mxu0 %v2781_v34  ;;  %2802 = vmatpush3.bf16.msra.mxu1 %v2799_v19  ;;  %v255_v34 = vld [vmem:[#allocation3 + $0x148] sm:$0xff] }
  0xdc   :  { %2784 = vmatprep.subr.bf16.mxu0 %v2783_v35  ;;  %2804 = vmatprep.subr.bf16.mxu1 %v2803_v22  ;;  %v2819_v35 = vpack.c.bf16 %v255_v34, %v252_v33 }
  0xdf   :  { %2786 = vmatpush1.bf16.msra.mxu0 %v2785_v40  ;;  %2806 = vmatpush3.bf16.msra.mxu1 %v2803_v22 }
  0xe0   :  { %2788 = vmatprep.subr.bf16.mxu0 %v2787_v41  ;;  %2808 = vmatprep.subr.bf16.mxu1 %v2807_v25 }
  0xe3   :  { %2790 = vmatpush1.bf16.msra.mxu0 %v2789_v46  ;;  %2810 = vmatpush3.bf16.msra.mxu1 %v2807_v25  ;;  %v3789_v46 = vld [vmem:[%s4125_s20 + $0x1] ss:$0 sm:$0xff] }
  0xe4   :  { %2792 = vmatprep.subr.bf16.mxu0 %v2791_v47  ;;  %2812 = vmatprep.subr.bf16.mxu1 %v2811_v29 }
  0xe7   :  { %2794 = vmatpush1.bf16.msra.mxu0 %v2793_v50  ;;  %2814 = vmatpush3.bf16.msra.mxu1 %v2811_v29 }
  0xe8   :  { %2827 = vmatprep.subr.bf16.mxu0 %v3471_v52  ;;  %2816 = vmatprep.subr.bf16.mxu1 %v2815_v32 }
  0xea   :  { %344 = vmatmul.mubr.f32.vlgmr.msra.gmra.mrb[0].mxu0 %v3727_v27 }
  0xeb   :  { %349 = vmatprep.mubr.f32.mxu0 %v3470_v1  ;;  %2818 = vmatpush3.bf16.msra.mxu1 %v2815_v32 }
  0xec   :  { %2820 = vmatprep.subr.bf16.mxu1 %v2819_v35 }
  0xee   :  { %350 = vmatmul.mubr.f32.gmra.mrb[2].mxu0 %v3735_v51 }
  0xef   :  { %2466 = vmatprep.mubr.msk.f32.mxu0 %vm3472_vm0, %v3470_v1  ;;  %2822 = vmatpush3.bf16.msra.mxu1 %v2819_v35 }
  0xf0   :  { %2824 = vmatprep.subr.bf16.mxu1 %v2823_v38 }
  0xf3   :  { %2826 = vmatpush3.bf16.msra.mxu1 %v2823_v38  ;;  %v795_v38 = vld [vmem:[%s4096_s4 + $0x8] sm:$0xff] }
  0xf6   :  { %2460 = vmatmul.mubr.f32.vlgmr.msra.gmra.mrb[0].mxu1 %v3735_v51 }
 0x1bd   :  { %v345_v59 = vpop.f32.mrb[0].mxu0 }
 0x1be   :  { %v347_v62 = vpop.f32.mrb[1].mxu0  ;;  %v346_v12 = vadd.f32 %v345_v59, %v267_v10 }
 0x1bf   :  { %v348_v63 = vadd.f32 %v347_v62, %v271_v58 }
 0x1c1   :  { %v431_v0 = vmul.f32 %v3754_v60, %v348_v63  ;;  %v433_v2 = vmul.f32 %v3757_v61, %v348_v63  ;;  %v351_v3 = vpop.f32.mrb[2].mxu0 }
 0x1c2   :  { %v353_v5 = vpop.f32.mrb[3].mxu0  ;;  %v352_v13 = vadd.f32 %v351_v3, %v267_v10 }
 0x1c3   :  { %v2828_v6 = vpack.c.bf16 %v433_v2, %v431_v0  ;;  %v354_v7 = vadd.f32 %v353_v5, %v271_v58 }
 0x1c5   :  { %v432_v8 = vmul.f32 %v3754_v60, %v354_v7  ;;  %v434_v9 = vmul.f32 %v3757_v61, %v354_v7  ;;  %2829 = vmatpush3.bf16.xpose.msra.mxu0 %v2828_v6 }
 0x1c6   :  { %2830 = vmatprep.subr.bf16.mxu0 %v3471_v52 }
 0x1c7   :  { %v2831_v11 = vpack.c.bf16 %v434_v9, %v432_v8 }
 0x1c9   :  { %v2461_v22 = vpop.f32.mrb[0].mxu1 }
 0x1ca   :  { %v422_v23 = vpop.f32.mrb[1].mxu1  ;;  %v428_v25 = vadd.f32 %v2461_v22, %v275_v24  ;;  %v2224_v22 = vld [vmem:[%s4097_s5] ss:$0 sm:$0xff] }
 0x1cb   :  { %v423_v26 = vadd.f32 %v422_v23, %v275_v24 }
 0x1cc   :  { %2467 = vmatmul.mubr.f32.vlgmr.msra.gmra.mrb[4].mxu0 %v346_v12  ;;  %v436_v35 = vmul.f32 %v3754_v60, %v428_v25  ;;  %v438_v57 = vmul.f32 %v3757_v61, %v428_v25 }
 0x1cd   :  { %2832 = vmatpush3.bf16.xpose.msra.mxu0 %v2831_v11  ;;  %2473 = vmatprep.mubr.msk.f32.mxu0 %vm3472_vm0, %v3470_v1  ;;  %v435_v28 = vmul.f32 %v3754_v60, %v423_v26  ;;  %v437_v29 = vmul.f32 %v3757_v61, %v423_v26 }
 0x1ce   :  { %2833 = vmatprep.subr.bf16.mxu0 %v3471_v52 }
 0x1cf   :  { %v2834_v30 = vpack.c.bf16 %v437_v29, %v435_v28 }
 0x1d4   :  { %2474 = vmatmul.mubr.f32.vlgmr.msra.gmra.mrb[6].mxu0 %v352_v13 }
 0x1d5   :  { %2480 = vmatprep.mubr.msk.f32.mxu0 %vm3472_vm0, %v3470_v1  ;;  %2835 = vmatpush3.bf16.msra.mxu0 %v2834_v30  ;;  %v935_v30 = vld [vmem:[#allocation11] sm:$0xff] }
 0x1d6   :  { %2836 = vmatprep.subr.bf16.mxu0 %v3471_v52 }
 0x29f   :  { %v517_v40 = vpop.f32.mrb[4].mxu0 }
 0x2a0   :  { %v518_v41 = vadd.f32 %v3777_v39, %v517_v40  ;;  %v2468_v42 = vpop.f32.mrb[5].mxu0 }
 0x2a2   :  { %v593_v43 = vsel %vm213_vm3, %v518_v41, -1e+30  ;;  %v602_v45 = vsel %vm213_vm3, -1e+30, %v518_v41 }
 0x2a3   :  { %v596_v44 = vsel %vm595_vm4, %v593_v43, -inf  ;;  %v604_v48 = vsel %vm595_vm4, %v602_v45, -inf }
 0x2a4   :  { %597 = vmax.xlane.f32.xlu0 %v596_v44  ;;  %v2839_v44 = vpack.c.bf16 %v795_v38, %v794_v37 }
 0x2a7   :  { %v587_v47 = vpop.f32.mrb[6].mxu0 }
 0x2a8   :  { %v588_v49 = vadd.f32 %v3789_v46, %v587_v47  ;;  %605 = vmax.xlane.f32.xlu0 %v604_v48  ;;  %v2475_v50 = vpop.f32.mrb[7].mxu0  ;;  %v796_v47 = vld [vmem:[%s4096_s4 + $0x10] sm:$0xff]  ;;  %v797_v48 = vld [vmem:[%s4096_s4 + $0x18] sm:$0xff] }
 0x2aa   :  { %v594_v53 = vsel %vm213_vm3, %v588_v49, -1e+30  ;;  %v603_v59 = vsel %vm213_vm3, -1e+30, %v588_v49 }
 0x2ab   :  { %v599_v58 = vsel %vm595_vm4, %v594_v53, -inf  ;;  %v607_v62 = vsel %vm595_vm4, %v603_v59, -inf  ;;  %v798_v59 = vld [vmem:[%s4096_s4 + $0x20] sm:$0xff] }
 0x2ac   :  { %600 = vmax.xlane.f32.xlu1 %v599_v58  ;;  %v2843_v58 = vpack.c.bf16 %v797_v48, %v796_v47  ;;  %v942_v47 = vld [vmem:[#allocation11 + $0x38] sm:$0xff] }
 0x2b0   :  { %608 = vmax.xlane.f32.xlu1 %v607_v62  ;;  %v799_v62 = vld [vmem:[%s4096_s4 + $0x28] sm:$0xff] }
 0x331   :  { %v598_v63 = vpop.xlane.xlu0 %597 }
 0x335   :  { %v606_v0 = vpop.xlane.xlu0 %605 }
 0x336   :  { %v610_v2 = vsel %vm213_vm3, %v598_v63, %v606_v0  ;;  %v2847_v63 = vpack.c.bf16 %v799_v62, %v798_v59  ;;  %v800_v0 = vld [vmem:[%s4096_s4 + $0x30] sm:$0xff]  ;;  %v946_v59 = vld [vmem:[#allocation11 + $0x58] sm:$0xff] }
 0x337   :  { %v612_v3 = vsub.f32 %v518_v41, %v610_v2  ;;  %v2837_v41 = vpack.c.bf16 %v438_v57, %v436_v35  ;;  %v801_v2 = vld [vmem:[%s4096_s4 + $0x38] sm:$0xff]  ;;  %v939_v57 = vld [vmem:[#allocation11 + $0x20] sm:$0xff] }
 0x339   :  { %v614_v5 = vmul.f32 1.442695, %v612_v3  ;;  %v601_v6 = vpop.xlane.xlu1 %600  ;;  %v2851_v3 = vpack.c.bf16 %v801_v2, %v800_v0  ;;  %v948_v0 = vld [vmem:[#allocation11 + $0x68] sm:$0xff] }
 0x33b   :  { %3132 = vpow2.f32 %v614_v5  ;;  %v802_v5 = vld [vmem:[%s4096_s4 + $0x40] sm:$0xff] }
 0x33d   :  { %v609_v7 = vpop.xlane.xlu1 %608 }
 0x33e   :  { %v611_v8 = vsel %vm213_vm3, %v601_v6, %v609_v7  ;;  %v803_v6 = vld [vmem:[%s4096_s4 + $0x48] sm:$0xff] }
 0x33f   :  { %v613_v9 = vsub.f32 %v588_v49, %v611_v8  ;;  %v2855_v7 = vpack.c.bf16 %v803_v6, %v802_v5  ;;  %v804_v8 = vld [vmem:[%s4096_s4 + $0x50] sm:$0xff]  ;;  %v950_v5 = vld [vmem:[#allocation11 + $0x78] sm:$0xff] }
 0x341   :  { %v616_v10 = vmul.f32 1.442695, %v613_v9  ;;  %v805_v9 = vld [vmem:[%s4096_s4 + $0x58] sm:$0xff] }
 0x343   :  { %3134 = vpow2.f32 %v616_v10  ;;  %v2859_v10 = vpack.c.bf16 %v805_v9, %v804_v8  ;;  %v1036_v8 = vld [vmem:[#allocation14 + $0x8] sm:$0xff]  ;;  %v1037_v9 = vld [vmem:[#allocation14 + $0x10] sm:$0xff] }
 0x345   :  { %v3133_v11 = vpop.eup %3132 }
 0x346   :  { %v618_v12 = vsel %vm213_vm3, %v3133_v11, 0.0  ;;  %v626_v13 = vsel %vm213_vm3, 0.0, %v3133_v11 }
 0x347   :  { %v620_v14 = vsel %vm595_vm4, %v618_v12, 0.0  ;;  %v628_v15 = vsel %vm595_vm4, %v626_v13, 0.0  ;;  %v807_v12 = vld [vmem:[%s4096_s4 + $0x68] sm:$0xff] }
 0x348   :  { %621 = vadd.xlane.f32.xlu0 %v620_v14  ;;  %629 = vadd.xlane.f32.xlu1 %v628_v15  ;;  %v808_v14 = vld [vmem:[%s4096_s4 + $0x70] sm:$0xff]  ;;  %v809_v15 = vld [vmem:[%s4096_s4 + $0x78] sm:$0xff] }
 0x34d   :  { %v3135_v16 = vpop.eup %3134 }
 0x34e   :  { %v627_v17 = vsel %vm213_vm3, 0.0, %v3135_v16  ;;  %v619_v18 = vsel %vm213_vm3, %v3135_v16, 0.0 }
 0x34f   :  { %v631_v19 = vsel %vm595_vm4, %v627_v17, 0.0  ;;  %v623_v20 = vsel %vm595_vm4, %v619_v18, 0.0 }
 0x350   :  { %632 = vadd.xlane.f32.xlu1 %v631_v19  ;;  %624 = vadd.xlane.f32.xlu0 %v623_v20 }
 0x3d5   :  { %v622_v31 = vpop.xlane.xlu0 %621  ;;  %v630_v32 = vpop.xlane.xlu1 %629 }
 0x3d6   :  { %3136 = vrcp.f32 %v622_v31  ;;  %v936_v31 = vld [vmem:[#allocation11 + $0x8] sm:$0xff] }
 0x3d7   :  { %3138 = vrcp.f32 %v630_v32  ;;  %v937_v32 = vld [vmem:[#allocation11 + $0x10] sm:$0xff] }
 0x3dd   :  { %v625_v33 = vpop.xlane.xlu0 %624  ;;  %v633_v34 = vpop.xlane.xlu1 %632 }
 0x3de   :  { %3140 = vrcp.f32 %v625_v33  ;;  %v2871_v33 = vpack.c.bf16 %v936_v31, %v935_v30 }
 0x3df   :  { %3142 = vrcp.f32 %v633_v34  ;;  %v938_v34 = vld [vmem:[#allocation11 + $0x18] sm:$0xff] }
 0x3e0   :  { %v3137_v36 = vpop.eup %3136  ;;  %v2875_v35 = vpack.c.bf16 %v938_v34, %v937_v32  ;;  %2872 = vmatprep.subr.bf16.mxu1 %v2871_v33 }
 0x3e1   :  { %v3139_v40 = vpop.eup %3138  ;;  %2874 = vmatpush3.bf16.msra.mxu1 %v2871_v33 }
 0x3e2   :  { %v642_v42 = vsel %vm213_vm3, %v3137_v36, %v3139_v40  ;;  %v940_v36 = vld [vmem:[#allocation11 + $0x28] sm:$0xff]  ;;  %2876 = vmatprep.subr.bf16.mxu1 %v2875_v35 }
 0x3e3   :  { %v644_v43 = vmul.f32 %v3133_v11, %v642_v42  ;;  %v806_v11 = vld [vmem:[%s4096_s4 + $0x60] sm:$0xff]  ;;  %v2879_v37 = vpack.c.bf16 %v940_v36, %v939_v57 }
 0x3e4   :  { %v2863_v13 = vpack.c.bf16 %v807_v12, %v806_v11  ;;  %v1038_v11 = vld [vmem:[#allocation14 + $0x18] sm:$0xff] }
 0x3e5   :  { %646 = vst.msk [vmem:[%s4110_s18] sm:$0xff] %vm595_vm4, %v644_v43  ;;  %2481 = vmatmul.mubr.msk.f32.vlgmr.msra.gmra.mrb[8].mxu0 %vm595_vm4, %v644_v43  ;;  %2878 = vmatpush3.bf16.msra.mxu1 %v2875_v35  ;;  %v2907_v12 = vpack.c.bf16 %v1038_v11, %v1037_v9  ;;  %v2225_v36 = vld [vmem:[#allocation8] ss:$0 sm:$0xff] }
 0x3e6   :  { %2838 = vmatpush3.bf16.msra.mxu0 %v2837_v41  ;;  %2487 = vmatprep.mubr.msk.f32.mxu0 %vm3472_vm0, %v3470_v1  ;;  %v1180_v9 = vld [vmem:[#allocation3 + $0x1a0] sm:$0xff] }
 0x3e7   :  { %2840 = vmatprep.subr.bf16.mxu0 %v2839_v44  ;;  %2880 = vmatprep.subr.bf16.mxu1 %v2879_v37 }
 0x3e8   :  { %v3141_v45 = vpop.eup %3140 }
 0x3e9   :  { %v3143_v49 = vpop.eup %3142  ;;  %2882 = vmatpush3.bf16.msra.mxu1 %v2879_v37 }
 0x3ea   :  { %v643_v50 = vsel %vm213_vm3, %v3141_v45, %v3143_v49  ;;  %v941_v45 = vld [vmem:[#allocation11 + $0x30] sm:$0xff]  ;;  %v943_v49 = vld [vmem:[#allocation11 + $0x40] sm:$0xff] }
 0x3eb   :  { %v645_v53 = vmul.f32 %v3135_v16, %v643_v50  ;;  %v2867_v16 = vpack.c.bf16 %v809_v15, %v808_v14  ;;  %v2883_v48 = vpack.c.bf16 %v942_v47, %v941_v45  ;;  %v944_v50 = vld [vmem:[#allocation11 + $0x48] sm:$0xff]  ;;  %v1049_v47 = vld [vmem:[#allocation14 + $0x70] sm:$0xff] }
 0x3ec   :  { %v1040_v14 = vld [vmem:[#allocation14 + $0x28] sm:$0xff] }
 0x3ed   :  { %647 = vst.msk [vmem:[%s4110_s18 + $0x8] sm:$0xff] %vm595_vm4, %v645_v53  ;;  %2488 = vmatmul.mubr.msk.f32.vlgmr.msra.gmra.mrb[10].mxu0 %vm595_vm4, %v645_v53  ;;  %2884 = vmatprep.subr.bf16.mxu1 %v2883_v48  ;;  %v945_v53 = vld [vmem:[#allocation11 + $0x50] sm:$0xff] }
 0x3ee   :  { %2842 = vmatpush3.bf16.msra.mxu0 %v2839_v44  ;;  %2886 = vmatpush3.bf16.msra.mxu1 %v2883_v48  ;;  %v2891_v62 = vpack.c.bf16 %v946_v59, %v945_v53  ;;  %v1050_v48 = vld [vmem:[#allocation14 + $0x78] sm:$0xff] }
 0x3ef   :  { %2844 = vmatprep.subr.bf16.mxu0 %v2843_v58 }
 0x3f2   :  { %2846 = vmatpush3.bf16.msra.mxu0 %v2843_v58  ;;  %v2887_v58 = vpack.c.bf16 %v944_v50, %v943_v49  ;;  %v2931_v49 = vpack.c.bf16 %v1050_v48, %v1049_v47  ;;  %v2227_v50 = vld [vmem:[#allocation12] ss:$0 sm:$0xff]  ;;  %v1198_v47 = vld [vmem:[#allocation3 + $0x230] sm:$0xff] }
 0x3f3   :  { %2848 = vmatprep.subr.bf16.mxu0 %v2847_v63 }
 0x3f4   :  { %2888 = vmatprep.subr.bf16.mxu1 %v2887_v58 }
 0x3f5   :  { %2890 = vmatpush3.bf16.msra.mxu1 %v2887_v58 }
 0x3f6   :  { %2850 = vmatpush3.bf16.msra.mxu0 %v2847_v63  ;;  %v947_v63 = vld [vmem:[#allocation11 + $0x60] sm:$0xff]  ;;  %2892 = vmatprep.subr.bf16.mxu1 %v2891_v62 }
 0x3f7   :  { %2852 = vmatprep.subr.bf16.mxu0 %v2851_v3  ;;  %v2895_v2 = vpack.c.bf16 %v948_v0, %v947_v63  ;;  %v2228_v63 = vld [vmem:[#allocation15] ss:$0 sm:$0xff] }
 0x3f9   :  { %2894 = vmatpush3.bf16.msra.mxu1 %v2891_v62 }
 0x3fa   :  { %2854 = vmatpush3.bf16.msra.mxu0 %v2851_v3  ;;  %v949_v3 = vld [vmem:[#allocation11 + $0x70] sm:$0xff]  ;;  %2896 = vmatprep.subr.bf16.mxu1 %v2895_v2 }
 0x3fb   :  { %2856 = vmatprep.subr.bf16.mxu0 %v2855_v7  ;;  %v2899_v6 = vpack.c.bf16 %v950_v5, %v949_v3 }
 0x3fd   :  { %2898 = vmatpush3.bf16.msra.mxu1 %v2895_v2 }
 0x3fe   :  { %2858 = vmatpush3.bf16.msra.mxu0 %v2855_v7  ;;  %2900 = vmatprep.subr.bf16.mxu1 %v2899_v6  ;;  %v1035_v7 = vld [vmem:[#allocation14] sm:$0xff] }
 0x3ff   :  { %2860 = vmatprep.subr.bf16.mxu0 %v2859_v10 }
 0x401   :  { %2902 = vmatpush3.bf16.msra.mxu1 %v2899_v6 }
 0x402   :  { %2862 = vmatpush3.bf16.msra.mxu0 %v2859_v10  ;;  %v2903_v10 = vpack.c.bf16 %v1036_v8, %v1035_v7  ;;  %v1177_v8 = vld [vmem:[#allocation3 + $0x188] sm:$0xff] }
 0x403   :  { %2864 = vmatprep.subr.bf16.mxu0 %v2863_v13  ;;  %v2935_v11 = vpack.c.bf16 %v1180_v9, %v1177_v8  ;;  %v1210_v8 = vld [vmem:[#allocation3 + $0x290] sm:$0xff] }
 0x405   :  { %2936 = vmatprep.subr.bf16.mxu1 %v2935_v11  ;;  %v1206_v11 = vld [vmem:[#allocation3 + $0x270] sm:$0xff] }
 0x406   :  { %2866 = vmatpush3.bf16.msra.mxu0 %v2863_v13  ;;  %v1039_v13 = vld [vmem:[#allocation14 + $0x20] sm:$0xff] }
 0x407   :  { %2868 = vmatprep.subr.bf16.mxu0 %v2867_v16  ;;  %v2911_v15 = vpack.c.bf16 %v1040_v14, %v1039_v13  ;;  %v1178_v13 = vld [vmem:[#allocation3 + $0x190] sm:$0xff]  ;;  %v1181_v14 = vld [vmem:[#allocation3 + $0x1a8] sm:$0xff] }
 0x40a   :  { %2870 = vmatpush3.bf16.msra.mxu0 %v2867_v16  ;;  %v1041_v16 = vld [vmem:[#allocation14 + $0x30] sm:$0xff] }
 0x40b   :  { %2904 = vmatprep.subr.bf16.mxu0 %v2903_v10 }
 0x4b8   :  { %v717_v17 = vpop.f32.mrb[8].mxu0 }
 0x4b9   :  { %v2482_v18 = vpop.f32.mrb[9].mxu0  ;;  %2522 = vmatprep.mubr.f32.mxu0 %v717_v17  ;;  %v1042_v17 = vld [vmem:[#allocation14 + $0x38] sm:$0xff] }
 0x4ba   :  { %v2915_v18 = vpack.c.bf16 %v1042_v17, %v1041_v16  ;;  %v2967_v16 = vpack.c.bf16 %v1181_v14, %v1178_v13  ;;  %v1183_v17 = vld [vmem:[#allocation3 + $0x1b8] sm:$0xff]  ;;  %v1208_v13 = vld [vmem:[#allocation3 + $0x280] sm:$0xff] }
 0x4c0   :  { %v790_v19 = vpop.f32.mrb[10].mxu0 }
 0x4c1   :  { %v2489_v20 = vpop.f32.mrb[11].mxu0  ;;  %2523 = vmatmul.mubr.f32.vlgmr.msra.gmra.mrb[12].mxu0 %v790_v19  ;;  %v1043_v19 = vld [vmem:[#allocation14 + $0x40] sm:$0xff] }
 0x4c2   :  { %2906 = vmatpush3.bf16.msra.mxu0 %v2903_v10  ;;  %v1044_v20 = vld [vmem:[#allocation14 + $0x48] sm:$0xff]  ;;  %v1176_v10 = vld [vmem:[#allocation3 + $0x180] sm:$0xff] }
 0x4c3   :  { %2908 = vmatprep.subr.bf16.mxu0 %v2907_v12 }
 0x4c6   :  { %2910 = vmatpush3.bf16.msra.mxu0 %v2907_v12  ;;  %v1179_v12 = vld [vmem:[#allocation3 + $0x198] sm:$0xff] }
 0x4c7   :  { %2912 = vmatprep.subr.bf16.mxu0 %v2911_v15 }
 0x4ca   :  { %2914 = vmatpush3.bf16.msra.mxu0 %v2911_v15  ;;  %v2937_v15 = vpack.c.bf16 %v1179_v12, %v1176_v10  ;;  %v1209_v12 = vld [vmem:[#allocation3 + $0x288] sm:$0xff] }
 0x4cb   :  { %2916 = vmatprep.subr.bf16.mxu0 %v2915_v18  ;;  %v2957_v14 = vpack.c.bf16 %v1209_v12, %v1206_v11 }
 0x4ce   :  { %2918 = vmatpush3.bf16.msra.mxu0 %v2915_v18  ;;  %v1186_v18 = vld [vmem:[#allocation3 + $0x1d0] sm:$0xff] }
 0x594   :  { %v2524_v23 = vpop.f32.mrb[12].mxu0 }
 0x595   :  { %v889_v24 = vadd.f32 %v2524_v23, %v2224_v22  ;;  %v883_v25 = vpop.f32.mrb[13].mxu0  ;;  %v1045_v23 = vld [vmem:[#allocation14 + $0x50] sm:$0xff] }
 0x596   :  { %v884_v26 = vadd.f32 %v2224_v22, %v883_v25  ;;  %v2919_v22 = vpack.c.bf16 %v1044_v20, %v1043_v19  ;;  %v1182_v19 = vld [vmem:[#allocation3 + $0x1b0] sm:$0xff]  ;;  %v2939_v20 = vpack.c.bf16 %v1186_v18, %v1183_v17  ;;  %v1216_v17 = vld [vmem:[#allocation3 + $0x2c0] sm:$0xff] }
 0x597   :  { %v893_v28 = vadd.f32 %v889_v24, %v3735_v51  ;;  %v1046_v24 = vld [vmem:[#allocation14 + $0x58] sm:$0xff] }
 0x598   :  { %v892_v29 = vadd.f32 %v884_v26, %v3727_v27  ;;  %2920 = vmatprep.subr.bf16.mxu0 %v2919_v22  ;;  %v2923_v25 = vpack.c.bf16 %v1046_v24, %v1045_v23  ;;  %v1047_v26 = vld [vmem:[#allocation14 + $0x60] sm:$0xff]  ;;  %v1184_v23 = vld [vmem:[#allocation3 + $0x1c0] sm:$0xff]  ;;  %v1187_v24 = vld [vmem:[#allocation3 + $0x1d8] sm:$0xff] }
 0x599   :  { %898 = vadd.xlane.f32.xlu1 %v893_v28  ;;  %2922 = vmatpush3.bf16.msra.mxu0 %v2919_v22  ;;  %v1185_v22 = vld [vmem:[#allocation3 + $0x1c8] sm:$0xff] }
 0x59a   :  { %896 = vadd.xlane.f32.xlu0 %v892_v29  ;;  %2924 = vmatprep.subr.bf16.mxu0 %v2923_v25 }
 0x59d   :  { %2926 = vmatpush3.bf16.msra.mxu0 %v2923_v25  ;;  %v2941_v25 = vpack.c.bf16 %v1185_v22, %v1182_v19  ;;  %v1215_v22 = vld [vmem:[#allocation3 + $0x2b8] sm:$0xff] }
 0x626   :  { %v899_v51 = vpop.xlane.xlu1 %898 }
 0x627   :  { %v902_v38 = vmul.f32 0.0078125, %v899_v51  ;;  %v897_v27 = vpop.xlane.xlu0 %896 }
 0x628   :  { %v901_v40 = vmul.f32 0.0078125, %v897_v27  ;;  %v2226_v27 = vld [vmem:[#allocation9] ss:$0 sm:$0xff] }
 0x629   :  { %v3893_v41 = vsub.f32 %v893_v28, %v902_v38  ;;  %v1048_v28 = vld [vmem:[#allocation14 + $0x68] sm:$0xff] }
 0x62a   :  { %v3895_v42 = vsub.f32 %v892_v29, %v901_v40  ;;  %v2927_v29 = vpack.c.bf16 %v1048_v28, %v1047_v26  ;;  %v2971_v26 = vpack.c.bf16 %v1187_v24, %v1184_v23  ;;  %v1189_v28 = vld [vmem:[#allocation3 + $0x1e8] sm:$0xff]  ;;  %v1214_v23 = vld [vmem:[#allocation3 + $0x2b0] sm:$0xff] }
 0x62b   :  { %v906_v43 = vmul.f32 %v3893_v41, %v3893_v41  ;;  %v1217_v24 = vld [vmem:[#allocation3 + $0x2c8] sm:$0xff] }
 0x62c   :  { %v905_v44 = vmul.f32 %v3895_v42, %v3895_v42  ;;  %2928 = vmatprep.subr.bf16.mxu0 %v2927_v29 }
 0x62d   :  { %909 = vadd.xlane.f32.xlu1 %v906_v43  ;;  %2930 = vmatpush3.bf16.msra.mxu0 %v2927_v29  ;;  %v1192_v29 = vld [vmem:[#allocation3 + $0x200] sm:$0xff] }
 0x62e   :  { %907 = vadd.xlane.f32.xlu0 %v905_v44  ;;  %2932 = vmatprep.subr.bf16.mxu0 %v2931_v49 }
 0x631   :  { %2934 = vmatpush3.bf16.msra.mxu0 %v2931_v49  ;;  %v1194_v49 = vld [vmem:[#allocation3 + $0x210] sm:$0xff] }
 0x632   :  { %2968 = vmatprep.subr.bf16.mxu0 %v2967_v16 }
 0x6ba   :  { %v910_v30 = vpop.xlane.xlu1 %909 }
 0x6bb   :  { %v912_v31 = vmul.f32 0.0078125, %v910_v30  ;;  %v908_v32 = vpop.xlane.xlu0 %907  ;;  %v1188_v30 = vld [vmem:[#allocation3 + $0x1e0] sm:$0xff] }
 0x6bc   :  { %v911_v33 = vmul.f32 0.0078125, %v908_v32  ;;  %v1191_v32 = vld [vmem:[#allocation3 + $0x1f8] sm:$0xff] }
 0x6bd   :  { %v914_v34 = vadd.f32 1e-05, %v912_v31  ;;  %v2943_v31 = vpack.c.bf16 %v1192_v29, %v1189_v28  ;;  %v2991_v28 = vpack.c.bf16 %v1217_v24, %v1214_v23 }
 0x6be   :  { %v913_v35 = vadd.f32 1e-05, %v911_v33  ;;  %v1190_v33 = vld [vmem:[#allocation3 + $0x1f0] sm:$0xff] }
 0x6bf   :  { %3144 = vrsqrt.f32 %v914_v34  ;;  %v1193_v34 = vld [vmem:[#allocation3 + $0x208] sm:$0xff] }
 0x6c0   :  { %3146 = vrsqrt.f32 %v913_v35  ;;  %v2975_v35 = vpack.c.bf16 %v1193_v34, %v1190_v33  ;;  %v1218_v33 = vld [vmem:[#allocation3 + $0x2d0] sm:$0xff]  ;;  %v1221_v34 = vld [vmem:[#allocation3 + $0x2e8] sm:$0xff] }
 0x6c9   :  { %v3145_v57 = vpop.eup %3144 }
 0x6ca   :  { %v3147_v37 = vpop.eup %3146  ;;  %v918_v51 = vmul.f32 %v3145_v57, %v3893_v41  ;;  %v2945_v57 = vpack.c.bf16 %v1191_v32, %v1188_v30  ;;  %v1220_v30 = vld [vmem:[#allocation3 + $0x2e0] sm:$0xff] }
 0x6cb   :  { %v917_v38 = vmul.f32 %v3147_v37, %v3895_v42 }
 0x6cc   :  { %v926_v40 = vmul.f32 %v2225_v36, %v918_v51 }
 0x6cd   :  { %v925_v43 = vmul.f32 %v2225_v36, %v917_v38 }
 0x6ce   :  { %v934_v45 = vadd.f32 %v2226_v27, %v926_v40 }
 0x6cf   :  { %v933_v44 = vadd.f32 %v2226_v27, %v925_v43 }
 0x6d1   :  { %2557 = vmatprep.mubr.f32.mxu1 %v933_v44 }
 0x6d2   :  { %2558 = vmatmul.mubr.f32.vlgmr.msra.gmra.mrb[2].mxu1 %v934_v45 }
 0x6d3   :  { %1306 = vmatprep.mubr.f32.mxu1 %v3470_v1  ;;  %2938 = vmatpush1.bf16.msra.mxu1 %v2937_v15  ;;  %v1211_v15 = vld [vmem:[#allocation3 + $0x298] sm:$0xff] }
 0x6d4   :  { %2940 = vmatprep.subr.bf16.mxu1 %v2939_v20  ;;  %v2987_v18 = vpack.c.bf16 %v1211_v15, %v1208_v13  ;;  %v1212_v20 = vld [vmem:[#allocation3 + $0x2a0] sm:$0xff] }
 0x6d5   :  { %v2961_v29 = vpack.c.bf16 %v1215_v22, %v1212_v20 }
 0x6d7   :  { %2942 = vmatpush1.bf16.msra.mxu1 %v2941_v25  ;;  %v1219_v25 = vld [vmem:[#allocation3 + $0x2d8] sm:$0xff] }
 0x6d8   :  { %2944 = vmatprep.subr.bf16.mxu1 %v2943_v31  ;;  %v1223_v31 = vld [vmem:[#allocation3 + $0x2f8] sm:$0xff] }
 0x6db   :  { %2946 = vmatpush1.bf16.msra.mxu1 %v2945_v57  ;;  %v2965_v57 = vpack.c.bf16 %v1221_v34, %v1218_v33 }
 0x7a5   :  { %v2559_v53 = vpop.f32.mrb[2].mxu1 }
 0x7a6   :  { %v1030_v58 = vadd.f32 %v2559_v53, %v2227_v50  ;;  %v1024_v41 = vpop.f32.mrb[3].mxu1  ;;  %v1196_v53 = vld [vmem:[#allocation3 + $0x220] sm:$0xff] }
 0x7a7   :  { %v1025_v59 = vadd.f32 %v2227_v50, %v1024_v41  ;;  %v1197_v50 = vld [vmem:[#allocation3 + $0x228] sm:$0xff]  ;;  %v1199_v41 = vld [vmem:[#allocation3 + $0x238] sm:$0xff] }
 0x7a8   :  { %v1034_v62 = vmax.f32 %v1030_v58, 0.0  ;;  %v2949_v58 = vpack.c.bf16 %v1197_v50, %v1194_v49 }
 0x7a9   :  { %v1033_v42 = vmax.f32 %v1025_v59, 0.0  ;;  %v2979_v59 = vpack.c.bf16 %v1199_v41, %v1196_v53  ;;  %v2230_v53 = vld [vmem:[#allocation18] ss:$0 sm:$0xff] }
 0x7ab   :  { %2592 = vmatprep.mubr.f32.mxu0 %v1033_v42  ;;  %v1201_v42 = vld [vmem:[#allocation3 + $0x248] sm:$0xff] }
 0x7ac   :  { %2593 = vmatmul.mubr.f32.vlgmr.msra.gmra.mrb[14].mxu0 %v1034_v62  ;;  %v1204_v62 = vld [vmem:[#allocation3 + $0x260] sm:$0xff] }
 0x7ad   :  { %2970 = vmatpush3.bf16.msra.mxu0 %v2967_v16  ;;  %v1213_v16 = vld [vmem:[#allocation3 + $0x2a8] sm:$0xff] }
 0x7ae   :  { %2972 = vmatprep.subr.bf16.mxu0 %v2971_v26  ;;  %v2959_v19 = vpack.c.bf16 %v1216_v17, %v1213_v16 }
 0x7b1   :  { %2974 = vmatpush3.bf16.msra.mxu0 %v2971_v26  ;;  %v1222_v26 = vld [vmem:[#allocation3 + $0x2f0] sm:$0xff] }
 0x7b2   :  { %2976 = vmatprep.subr.bf16.mxu0 %v2975_v35  ;;  %v2963_v32 = vpack.c.bf16 %v1222_v26, %v1219_v25 }
 0x7b5   :  { %2978 = vmatpush3.bf16.msra.mxu0 %v2975_v35  ;;  %v2995_v35 = vpack.c.bf16 %v1223_v31, %v1220_v30 }
 0x7b6   :  { %2980 = vmatprep.subr.bf16.mxu0 %v2979_v59 }
 0x7b9   :  { %2982 = vmatpush3.bf16.msra.mxu0 %v2979_v59 }
 0x87f   :  { %v2594_v0 = vpop.f32.mrb[14].mxu0 }
 0x880   :  { %v1130_v2 = vadd.f32 %v2594_v0, %v2228_v63  ;;  %v1124_v3 = vpop.f32.mrb[15].mxu0  ;;  %v1200_v0 = vld [vmem:[#allocation3 + $0x240] sm:$0xff] }
 0x881   :  { %v1125_v5 = vadd.f32 %v2228_v63, %v1124_v3  ;;  %v2951_v63 = vpack.c.bf16 %v1204_v62, %v1201_v42  ;;  %v1202_v3 = vld [vmem:[#allocation3 + $0x250] sm:$0xff] }
 0x882   :  { %v1134_v6 = vadd.f32 %v1130_v2, %v934_v45  ;;  %v1195_v45 = vld [vmem:[#allocation3 + $0x218] sm:$0xff] }
 0x883   :  { %v1133_v7 = vadd.f32 %v1125_v5, %v933_v44  ;;  %v2947_v48 = vpack.c.bf16 %v1198_v47, %v1195_v45  ;;  %v1203_v2 = vld [vmem:[#allocation3 + $0x258] sm:$0xff]  ;;  %v2229_v47 = vld [vmem:[#allocation17] ss:$0 sm:$0xff] }
 0x884   :  { %1139 = vadd.xlane.f32.xlu1 %v1134_v6  ;;  %v2953_v5 = vpack.c.bf16 %v1203_v2, %v1200_v0 }
 0x885   :  { %1137 = vadd.xlane.f32.xlu0 %v1133_v7  ;;  %2948 = vmatprep.subr.bf16.mxu1 %v2947_v48 }
 0x886   :  { %2950 = vmatpush1.bf16.msra.mxu1 %v2949_v58 }
 0x887   :  { %2952 = vmatprep.subr.bf16.mxu1 %v2951_v63 }
 0x88a   :  { %2954 = vmatpush1.bf16.msra.mxu1 %v2953_v5 }
 0x911   :  { %v1140_v36 = vpop.xlane.xlu1 %1139 }
 0x912   :  { %v1142_v37 = vmul.f32 0.0078125, %v1140_v36  ;;  %v1138_v51 = vpop.xlane.xlu0 %1137 }
 0x913   :  { %v1141_v38 = vmul.f32 0.0078125, %v1138_v51 }
 0x914   :  { %v3904_v27 = vsub.f32 %v1134_v6, %v1142_v37  ;;  %v1205_v6 = vld [vmem:[#allocation3 + $0x268] sm:$0xff] }
 0x915   :  { %v3906_v40 = vsub.f32 %v1133_v7, %v1141_v38  ;;  %v1207_v7 = vld [vmem:[#allocation3 + $0x278] sm:$0xff]  ;;  %v2983_v9 = vpack.c.bf16 %v1205_v6, %v1202_v3 }
 0x916   :  { %v1146_v43 = vmul.f32 %v3904_v27, %v3904_v27  ;;  %v2955_v10 = vpack.c.bf16 %v1210_v8, %v1207_v7 }
 0x917   :  { %v1145_v44 = vmul.f32 %v3906_v40, %v3906_v40  ;;  %2984 = vmatprep.subr.bf16.mxu0 %v2983_v9 }
 0x918   :  { %1149 = vadd.xlane.f32.xlu1 %v1146_v43  ;;  %2956 = vmatprep.subr.bf16.mxu1 %v2955_v10 }
 0x919   :  { %1147 = vadd.xlane.f32.xlu0 %v1145_v44  ;;  %2986 = vmatpush3.bf16.msra.mxu0 %v2983_v9 }
 0x91a   :  { %2988 = vmatprep.subr.bf16.mxu0 %v2987_v18  ;;  %2958 = vmatpush1.bf16.msra.mxu1 %v2957_v14 }
 0x91b   :  { %2960 = vmatprep.subr.bf16.mxu1 %v2959_v19 }
 0x91d   :  { %2990 = vmatpush3.bf16.msra.mxu0 %v2987_v18 }
 0x91e   :  { %2992 = vmatprep.subr.bf16.mxu0 %v2991_v28  ;;  %2962 = vmatpush1.bf16.msra.mxu1 %v2961_v29 }
 0x91f   :  { %2964 = vmatprep.subr.bf16.mxu1 %v2963_v32 }
 0x921   :  { %2994 = vmatpush3.bf16.msra.mxu0 %v2991_v28 }
 0x922   :  { %2996 = vmatprep.subr.bf16.mxu0 %v2995_v35  ;;  %2966 = vmatpush1.bf16.msra.mxu1 %v2965_v57 }
 0x923   :  { %2999 = vmatprep.subr.bf16.mxu1 %v3471_v52 }
 0x925   :  { %2998 = vmatpush3.bf16.msra.mxu0 %v2995_v35 }
 0x9a5   :  { %v1150_v36 = vpop.xlane.xlu1 %1149 }
 0x9a6   :  { %v1152_v37 = vmul.f32 0.0078125, %v1150_v36  ;;  %v1148_v51 = vpop.xlane.xlu0 %1147 }
 0x9a7   :  { %v1151_v38 = vmul.f32 0.0078125, %v1148_v51 }
 0x9a8   :  { %v1154_v43 = vadd.f32 1e-05, %v1152_v37 }
 0x9a9   :  { %v1153_v44 = vadd.f32 1e-05, %v1151_v38 }
 0x9aa   :  { %3148 = vrsqrt.f32 %v1154_v43 }
 0x9ab   :  { %3150 = vrsqrt.f32 %v1153_v44 }
 0x9b4   :  { %v3149_v45 = vpop.eup %3148 }
 0x9b5   :  { %v3151_v48 = vpop.eup %3150  ;;  %v1158_v49 = vmul.f32 %v3149_v45, %v3904_v27  ;;  %v1225_v27 = vld [vmem:[#allocation6 + $0x3] sm:$0x7] }
 0x9b6   :  { %v1157_v50 = vmul.f32 %v3151_v48, %v3906_v40  ;;  %v1234_v40 = vrot.slane %v1225_v27, %v270_v56  ;;  %v1238_v62 = vrot.slane %v1225_v27, %v274_v21  ;;  %v1230_v56 = vrot.slane %v1225_v27, %v266_v4 }
 0x9b7   :  { %v1166_v58 = vmul.f32 %v2229_v47, %v1158_v49 }
 0x9b8   :  { %v1165_v41 = vmul.f32 %v2229_v47, %v1157_v50 }
 0x9b9   :  { %v3917_v42 = vadd.f32 %v2230_v53, %v1166_v58 }
 0x9ba   :  { %v3915_v59 = vadd.f32 %v2230_v53, %v1165_v41 }
 0x9bc   :  { %1307 = vmatmul.mubr.f32.vlgmr.msra.gmra.mrb[4].mxu1 %v3915_v59  ;;  %2627 = vmatprep.mubr.f32.mxu0 %v3915_v59 }
 0x9bd   :  { %2628 = vmatmul.mubr.f32.vlgmr.msra.gmra.mrb[16].mxu0 %v3917_v42  ;;  %1312 = vmatprep.mubr.f32.mxu1 %v3470_v1 }
 0x9c0   :  { %1313 = vmatmul.mubr.f32.gmra.mrb[6].mxu1 %v3917_v42 }
 0x9c1   :  { %2634 = vmatprep.mubr.msk.f32.mxu1 %vm3472_vm0, %v3470_v1 }
 0xa8f   :  { %v1308_v63 = vpop.f32.mrb[4].mxu1 }
 0xa90   :  { %v1310_v0 = vpop.f32.mrb[5].mxu1  ;;  %v2629_v2 = vpop.f32.mrb[16].mxu0  ;;  %v1309_v14 = vadd.f32 %v1308_v63, %v1230_v56 }
 0xa91   :  { %v1311_v3 = vadd.f32 %v1310_v0, %v1234_v40  ;;  %v3930_v5 = vadd.f32 %v2629_v2, %v1238_v62  ;;  %v1385_v6 = vpop.f32.mrb[17].mxu0 }
 0xa92   :  { %v1386_v15 = vadd.f32 %v1385_v6, %v1238_v62 }
 0xa93   :  { %v1394_v7 = vmul.f32 %v3754_v60, %v1311_v3  ;;  %v1396_v8 = vmul.f32 %v3757_v61, %v1311_v3  ;;  %v1314_v9 = vpop.f32.mrb[6].mxu1  ;;  %v1399_v6 = vmul.f32 %v3754_v60, %v3930_v5 }
 0xa94   :  { %v1316_v10 = vpop.f32.mrb[7].mxu1  ;;  %v1398_v17 = vmul.f32 %v3754_v60, %v1386_v15  ;;  %v1400_v4 = vmul.f32 %v3757_v61, %v1386_v15  ;;  %v1315_v18 = vadd.f32 %v1314_v9, %v1230_v56  ;;  %v2234_v9 = vld [vmem:[%s4096_s4 + $0x88] sm:$0xff] }
 0xa95   :  { %v3000_v11 = vpack.c.bf16 %v1396_v8, %v1394_v7  ;;  %v1317_v12 = vadd.f32 %v1316_v10, %v1234_v40  ;;  %v1401_v7 = vmul.f32 %v3757_v61, %v3930_v5  ;;  %v2233_v8 = vld [vmem:[%s4096_s4 + $0x80] sm:$0xff]  ;;  %v2236_v5 = vld [vmem:[%s4096_s4 + $0x98] sm:$0xff] }
 0xa96   :  { %v3006_v19 = vpack.c.bf16 %v1400_v4, %v1398_v17  ;;  %v3011_v56 = vpack.c.bf16 %v2234_v9, %v2233_v8  ;;  %v2238_v17 = vld [vmem:[%s4096_s4 + $0xa8] sm:$0xff] }
 0xa97   :  { %3001 = vmatpush3.bf16.xpose.msra.mxu1 %v3000_v11  ;;  %v1395_v21 = vmul.f32 %v3754_v60, %v1317_v12  ;;  %v1397_v13 = vmul.f32 %v3757_v61, %v1317_v12  ;;  %v2235_v61 = vld [vmem:[%s4096_s4 + $0x90] sm:$0xff] }
 0xa98   :  { %3002 = vmatprep.subr.bf16.mxu1 %v3471_v52  ;;  %v1895_v9 = vld [vmem:[#allocation11 + $0xc0] sm:$0xff] }
 0xa99   :  { %v3003_v16 = vpack.c.bf16 %v1397_v13, %v1395_v21  ;;  %v3009_v21 = vpack.c.bf16 %v1401_v7, %v1399_v6  ;;  %v1893_v6 = vld [vmem:[#allocation11 + $0xb0] sm:$0xff]  ;;  %v1894_v7 = vld [vmem:[#allocation11 + $0xb8] sm:$0xff] }
 0xa9a   :  { %v3055_v8 = vpack.c.bf16 %v1894_v7, %v1893_v6 }
 0xa9e   :  { %2635 = vmatmul.mubr.f32.vlgmr.msra.gmra.mrb[8].mxu1 %v1309_v14 }
 0xa9f   :  { %3004 = vmatpush3.bf16.xpose.msra.mxu1 %v3003_v16  ;;  %2641 = vmatprep.mubr.msk.f32.mxu1 %vm3472_vm0, %v3470_v1  ;;  %v3015_v16 = vpack.c.bf16 %v2236_v5, %v2235_v61  ;;  %v1900_v61 = vld [vmem:[#allocation11 + $0xe8] sm:$0xff] }
 0xaa0   :  { %3005 = vmatprep.subr.bf16.mxu1 %v3471_v52 }
 0xaa6   :  { %2642 = vmatmul.mubr.f32.vlgmr.msra.gmra.mrb[10].mxu1 %v1315_v18  ;;  %v2239_v18 = vld [vmem:[%s4096_s4 + $0xb0] sm:$0xff] }
 0xaa7   :  { %3007 = vmatpush3.bf16.msra.mxu1 %v3006_v19  ;;  %2648 = vmatprep.mubr.msk.f32.mxu1 %vm3472_vm0, %v3470_v1  ;;  %v2240_v19 = vld [vmem:[%s4096_s4 + $0xb8] sm:$0xff] }
 0xaa8   :  { %3008 = vmatprep.subr.bf16.mxu1 %v3471_v52 }
 0xb71   :  { %v1468_v20 = vpop.f32.mrb[8].mxu1 }
 0xb72   :  { %v1469_v22 = vadd.f32 %v3777_v39, %v1468_v20  ;;  %v2636_v23 = vpop.f32.mrb[9].mxu1  ;;  %v3023_v20 = vpack.c.bf16 %v2240_v19, %v2239_v18  ;;  %v1992_v18 = vld [vmem:[#allocation14 + $0x98] sm:$0xff] }
 0xb73   :  { %v2242_v23 = vld [vmem:[%s4096_s4 + $0xc8] sm:$0xff] }
 0xb74   :  { %v1550_v24 = vsel %vm213_vm3, -1e+30, %v1469_v22  ;;  %v1542_v25 = vsel %vm213_vm3, %v1469_v22, -1e+30 }
 0xb75   :  { %v1552_v26 = vsel %vm595_vm4, %v1550_v24, -inf  ;;  %v1544_v28 = vsel %vm595_vm4, %v1542_v25, -inf  ;;  %v2243_v25 = vld [vmem:[%s4096_s4 + $0xd0] sm:$0xff] }
 0xb76   :  { %1553 = vmax.xlane.f32.xlu1 %v1552_v26  ;;  %1545 = vmax.xlane.f32.xlu0 %v1544_v28  ;;  %v2244_v26 = vld [vmem:[%s4096_s4 + $0xd8] sm:$0xff] }
 0xb77   :  { %v3031_v28 = vpack.c.bf16 %v2244_v26, %v2243_v25  ;;  %v1996_v25 = vld [vmem:[#allocation14 + $0xb8] sm:$0xff] }
 0xb79   :  { %v1538_v29 = vpop.f32.mrb[10].mxu1 }
 0xb7a   :  { %v1539_v30 = vadd.f32 %v3789_v46, %v1538_v29  ;;  %v2643_v52 = vpop.f32.mrb[11].mxu1  ;;  %v2245_v29 = vld [vmem:[%s4096_s4 + $0xe0] sm:$0xff] }
 0xb7c   :  { %v1551_v39 = vsel %vm213_vm3, -1e+30, %v1539_v30  ;;  %v1543_v31 = vsel %vm213_vm3, %v1539_v30, -1e+30 }
 0xb7d   :  { %v1555_v32 = vsel %vm595_vm4, %v1551_v39, -inf  ;;  %v1547_v33 = vsel %vm595_vm4, %v1543_v31, -inf  ;;  %v2247_v39 = vld [vmem:[%s4096_s4 + $0xf0] sm:$0xff]  ;;  %v2248_v31 = vld [vmem:[%s4096_s4 + $0xf8] sm:$0xff] }
 0xb7e   :  { %1556 = vmax.xlane.f32.xlu1 %v1555_v32  ;;  %1548 = vmax.xlane.f32.xlu0 %v1547_v33  ;;  %v3039_v32 = vpack.c.bf16 %v2248_v31, %v2247_v39  ;;  %v2000_v39 = vld [vmem:[#allocation14 + $0xd8] sm:$0xff] }
 0xc03   :  { %v1554_v34 = vpop.xlane.xlu1 %1553  ;;  %v1546_v35 = vpop.xlane.xlu0 %1545 }
 0xc04   :  { %v1558_v57 = vsel %vm213_vm3, %v1546_v35, %v1554_v34 }
 0xc05   :  { %v1560_v36 = vsub.f32 %v1469_v22, %v1558_v57  ;;  %v2241_v22 = vld [vmem:[%s4096_s4 + $0xc0] sm:$0xff] }
 0xc06   :  { %v3027_v24 = vpack.c.bf16 %v2242_v23, %v2241_v22  ;;  %v1994_v22 = vld [vmem:[#allocation14 + $0xa8] sm:$0xff] }
 0xc07   :  { %v1562_v46 = vmul.f32 1.442695, %v1560_v36  ;;  %v2250_v36 = vld [vmem:[%s4097_s5 + $0x1] ss:$0 sm:$0xff] }
 0xc09   :  { %3152 = vpow2.f32 %v1562_v46 }
 0xc0b   :  { %v1557_v37 = vpop.xlane.xlu1 %1556  ;;  %v1549_v51 = vpop.xlane.xlu0 %1548 }
 0xc0c   :  { %v1559_v38 = vsel %vm213_vm3, %v1549_v51, %v1557_v37 }
 0xc0d   :  { %v1561_v43 = vsub.f32 %v1539_v30, %v1559_v38  ;;  %v2246_v30 = vld [vmem:[%s4096_s4 + $0xe8] sm:$0xff] }
 0xc0e   :  { %v3035_v52 = vpack.c.bf16 %v2246_v30, %v2245_v29  ;;  %v1998_v29 = vld [vmem:[#allocation14 + $0xc8] sm:$0xff] }
 0xc0f   :  { %v1564_v44 = vmul.f32 1.442695, %v1561_v43 }
 0xc11   :  { %3154 = vpow2.f32 %v1564_v44 }
 0xc13   :  { %v3153_v45 = vpop.eup %3152 }
 0xc14   :  { %v1574_v47 = vsel %vm213_vm3, 0.0, %v3153_v45  ;;  %v1566_v48 = vsel %vm213_vm3, %v3153_v45, 0.0 }
 0xc15   :  { %v1576_v49 = vsel %vm595_vm4, %v1574_v47, 0.0  ;;  %v1568_v50 = vsel %vm595_vm4, %v1566_v48, 0.0  ;;  %v1888_v47 = vld [vmem:[#allocation11 + $0x88] sm:$0xff]  ;;  %v1889_v48 = vld [vmem:[#allocation11 + $0x90] sm:$0xff] }
 0xc16   :  { %1577 = vadd.xlane.f32.xlu1 %v1576_v49  ;;  %1569 = vadd.xlane.f32.xlu0 %v1568_v50  ;;  %v1890_v50 = vld [vmem:[#allocation11 + $0x98] sm:$0xff] }
 0xc1b   :  { %v3155_v53 = vpop.eup %3154 }
 0xc1c   :  { %v1575_v58 = vsel %vm213_vm3, 0.0, %v3155_v53  ;;  %v1567_v41 = vsel %vm213_vm3, %v3155_v53, 0.0 }
 0xc1d   :  { %v1579_v27 = vsel %vm595_vm4, %v1575_v58, 0.0  ;;  %v1571_v40 = vsel %vm595_vm4, %v1567_v41, 0.0  ;;  %v1891_v58 = vld [vmem:[#allocation11 + $0xa0] sm:$0xff]  ;;  %v1892_v41 = vld [vmem:[#allocation11 + $0xa8] sm:$0xff] }
 0xc1e   :  { %1580 = vadd.xlane.f32.xlu1 %v1579_v27  ;;  %1572 = vadd.xlane.f32.xlu0 %v1571_v40  ;;  %v3051_v27 = vpack.c.bf16 %v1892_v41, %v1891_v58  ;;  %v2003_v41 = vld [vmem:[#allocation14 + $0xf0] sm:$0xff] }
 0xca3   :  { %v1578_v62 = vpop.xlane.xlu1 %1577  ;;  %v1570_v63 = vpop.xlane.xlu0 %1569 }
 0xca4   :  { %3156 = vrcp.f32 %v1578_v62 }
 0xca5   :  { %3158 = vrcp.f32 %v1570_v63 }
 0xcab   :  { %v1581_v0 = vpop.xlane.xlu1 %1580  ;;  %v1573_v2 = vpop.xlane.xlu0 %1572 }
 0xcac   :  { %3160 = vrcp.f32 %v1581_v0 }
 0xcad   :  { %3162 = vrcp.f32 %v1573_v2 }
 0xcae   :  { %v3157_v3 = vpop.eup %3156 }
 0xcaf   :  { %v3159_v10 = vpop.eup %3158 }
 0xcb0   :  { %v1590_v11 = vsel %vm213_vm3, %v3159_v10, %v3157_v3  ;;  %v1896_v10 = vld [vmem:[#allocation11 + $0xc8] sm:$0xff] }
 0xcb1   :  { %v1592_v12 = vmul.f32 %v3153_v45, %v1590_v11  ;;  %v1887_v45 = vld [vmem:[#allocation11 + $0x80] sm:$0xff]  ;;  %v1897_v11 = vld [vmem:[#allocation11 + $0xd0] sm:$0xff] }
 0xcb2   :  { %v3043_v49 = vpack.c.bf16 %v1888_v47, %v1887_v45 }
 0xcb3   :  { %1594 = vst.msk [vmem:[%s4111_s19] sm:$0xff] %vm595_vm4, %v1592_v12  ;;  %2649 = vmatmul.mubr.msk.f32.vlgmr.msra.gmra.mrb[12].mxu1 %vm595_vm4, %v1592_v12  ;;  %v3059_v12 = vpack.c.bf16 %v1896_v10, %v1895_v9 }
 0xcb4   :  { %3010 = vmatpush3.bf16.msra.mxu1 %v3009_v21  ;;  %2655 = vmatprep.mubr.msk.f32.mxu1 %vm3472_vm0, %v3470_v1  ;;  %v2237_v1 = vld [vmem:[%s4096_s4 + $0xa0] sm:$0xff] }
 0xcb5   :  { %3012 = vmatprep.subr.bf16.mxu1 %v3011_v56  ;;  %v3019_v4 = vpack.c.bf16 %v2238_v17, %v2237_v1  ;;  %3044 = vmatprep.subr.bf16.mxu0 %v3043_v49  ;;  %v1990_v1 = vld [vmem:[#allocation14 + $0x88] sm:$0xff]  ;;  %v1991_v17 = vld [vmem:[#allocation14 + $0x90] sm:$0xff] }
 0xcb6   :  { %v3161_v60 = vpop.eup %3160  ;;  %3046 = vmatpush3.bf16.msra.mxu0 %v3043_v49  ;;  %v3079_v19 = vpack.c.bf16 %v1992_v18, %v1991_v17 }
 0xcb7   :  { %v3163_v13 = vpop.eup %3162 }
 0xcb8   :  { %v1591_v14 = vsel %vm213_vm3, %v3163_v13, %v3161_v60  ;;  %v1899_v60 = vld [vmem:[#allocation11 + $0xe0] sm:$0xff]  ;;  %v1901_v13 = vld [vmem:[#allocation11 + $0xf0] sm:$0xff] }
 0xcb9   :  { %v1593_v15 = vmul.f32 %v3155_v53, %v1591_v14  ;;  %v3047_v53 = vpack.c.bf16 %v1890_v50, %v1889_v48  ;;  %v3067_v5 = vpack.c.bf16 %v1900_v61, %v1899_v60  ;;  %v1902_v14 = vld [vmem:[#allocation11 + $0xf8] sm:$0xff] }
 0xcba   :  { %v2252_v48 = vld [vmem:[#allocation9 + $0x1] ss:$0 sm:$0xff] }
 0xcbb   :  { %1595 = vst.msk [vmem:[%s4111_s19 + $0x8] sm:$0xff] %vm595_vm4, %v1593_v15  ;;  %2656 = vmatmul.mubr.msk.f32.vlgmr.msra.gmra.mrb[14].mxu1 %vm595_vm4, %v1593_v15  ;;  %3048 = vmatprep.subr.bf16.mxu0 %v3047_v53  ;;  %v3071_v15 = vpack.c.bf16 %v1902_v14, %v1901_v13 }
 0xcbc   :  { %3014 = vmatpush3.bf16.msra.mxu1 %v3011_v56  ;;  %3050 = vmatpush3.bf16.msra.mxu0 %v3047_v53  ;;  %v1898_v56 = vld [vmem:[#allocation11 + $0xd8] sm:$0xff] }
 0xcbd   :  { %3016 = vmatprep.subr.bf16.mxu1 %v3015_v16  ;;  %3052 = vmatprep.subr.bf16.mxu0 %v3051_v27  ;;  %v3063_v21 = vpack.c.bf16 %v1898_v56, %v1897_v11 }
 0xcc0   :  { %3018 = vmatpush3.bf16.msra.mxu1 %v3015_v16  ;;  %3054 = vmatpush3.bf16.msra.mxu0 %v3051_v27  ;;  %v1989_v16 = vld [vmem:[#allocation14 + $0x80] sm:$0xff]  ;;  %v2004_v27 = vld [vmem:[#allocation14 + $0xf8] sm:$0xff] }
 0xcc1   :  { %3020 = vmatprep.subr.bf16.mxu1 %v3019_v4  ;;  %3056 = vmatprep.subr.bf16.mxu0 %v3055_v8 }
 0xcc4   :  { %3022 = vmatpush3.bf16.msra.mxu1 %v3019_v4  ;;  %3058 = vmatpush3.bf16.msra.mxu0 %v3055_v8  ;;  %v3075_v4 = vpack.c.bf16 %v1990_v1, %v1989_v16  ;;  %v3473_v16 = vmov 0  }
 0xcc5   :  { %3024 = vmatprep.subr.bf16.mxu1 %v3023_v20  ;;  %3060 = vmatprep.subr.bf16.mxu0 %v3059_v12 }
 0xcc6   :  { %3131 = vset.pattern.permute.xlu0 %v3473_v16 }
 0xcc8   :  { %3026 = vmatpush3.bf16.msra.mxu1 %v3023_v20  ;;  %3062 = vmatpush3.bf16.msra.mxu0 %v3059_v12  ;;  %v1993_v20 = vld [vmem:[#allocation14 + $0xa0] sm:$0xff] }
 0xcc9   :  { %3028 = vmatprep.subr.bf16.mxu1 %v3027_v24  ;;  %3064 = vmatprep.subr.bf16.mxu0 %v3063_v21  ;;  %v3083_v23 = vpack.c.bf16 %v1994_v22, %v1993_v20 }
 0xccc   :  { %3030 = vmatpush3.bf16.msra.mxu1 %v3027_v24  ;;  %3066 = vmatpush3.bf16.msra.mxu0 %v3063_v21  ;;  %v1995_v24 = vld [vmem:[#allocation14 + $0xb0] sm:$0xff] }
 0xccd   :  { %3032 = vmatprep.subr.bf16.mxu1 %v3031_v28  ;;  %3068 = vmatprep.subr.bf16.mxu0 %v3067_v5  ;;  %v3087_v26 = vpack.c.bf16 %v1996_v25, %v1995_v24 }
 0xcd0   :  { %3034 = vmatpush3.bf16.msra.mxu1 %v3031_v28  ;;  %3070 = vmatpush3.bf16.msra.mxu0 %v3067_v5  ;;  %v1997_v28 = vld [vmem:[#allocation14 + $0xc0] sm:$0xff] }
 0xcd1   :  { %3036 = vmatprep.subr.bf16.mxu1 %v3035_v52  ;;  %3072 = vmatprep.subr.bf16.mxu0 %v3071_v15  ;;  %v3091_v30 = vpack.c.bf16 %v1998_v29, %v1997_v28 }
 0xcd4   :  { %3038 = vmatpush3.bf16.msra.mxu1 %v3035_v52  ;;  %3074 = vmatpush3.bf16.msra.mxu0 %v3071_v15  ;;  %v1999_v52 = vld [vmem:[#allocation14 + $0xd0] sm:$0xff] }
 0xcd5   :  { %3040 = vmatprep.subr.bf16.mxu1 %v3039_v32  ;;  %v3095_v31 = vpack.c.bf16 %v2000_v39, %v1999_v52 }
 0xcd8   :  { %3042 = vmatpush3.bf16.msra.mxu1 %v3039_v32  ;;  %v2001_v32 = vld [vmem:[#allocation14 + $0xe0] sm:$0xff] }
 0xcd9   :  { %3076 = vmatprep.subr.bf16.mxu1 %v3075_v4 }
 0xd86   :  { %v1665_v33 = vpop.f32.mrb[12].mxu1 }
 0xd87   :  { %v2650_v34 = vpop.f32.mrb[13].mxu1  ;;  %2690 = vmatprep.mubr.f32.mxu1 %v1665_v33  ;;  %v2002_v33 = vld [vmem:[#allocation14 + $0xe8] sm:$0xff] }
 0xd88   :  { %v3099_v34 = vpack.c.bf16 %v2002_v33, %v2001_v32 }
 0xd8e   :  { %v1738_v35 = vpop.f32.mrb[14].mxu1 }
 0xd8f   :  { %v2657_v57 = vpop.f32.mrb[15].mxu1  ;;  %2691 = vmatmul.mubr.f32.vlgmr.msra.gmra.mrb[16].mxu1 %v1738_v35 }
 0xd90   :  { %3078 = vmatpush3.bf16.msra.mxu1 %v3075_v4 }
 0xd91   :  { %3080 = vmatprep.subr.bf16.mxu1 %v3079_v19 }
 0xd94   :  { %3082 = vmatpush3.bf16.msra.mxu1 %v3079_v19 }
 0xd95   :  { %3084 = vmatprep.subr.bf16.mxu1 %v3083_v23 }
 0xd98   :  { %3086 = vmatpush3.bf16.msra.mxu1 %v3083_v23  ;;  %v2255_v23 = vld [vmem:[#allocation17 + $0x1] ss:$0 sm:$0xff] }
 0xd99   :  { %3088 = vmatprep.subr.bf16.mxu1 %v3087_v26 }
 0xd9c   :  { %3090 = vmatpush3.bf16.msra.mxu1 %v3087_v26  ;;  %v2256_v26 = vld [vmem:[#allocation18 + $0x1] ss:$0 sm:$0xff] }
 0xd9d   :  { %3092 = vmatprep.subr.bf16.mxu1 %v3091_v30 }
 0xda0   :  { %3094 = vmatpush3.bf16.msra.mxu1 %v3091_v30  ;;  %v2257_v30 = vld [vmem:[%s4106_s14] ss:$0 sm:$0xff] }
 0xda1   :  { %3096 = vmatprep.subr.bf16.mxu1 %v3095_v31 }
 0xda4   :  { %3098 = vmatpush3.bf16.msra.mxu1 %v3095_v31 }
 0xda5   :  { %3100 = vmatprep.subr.bf16.mxu1 %v3099_v34 }
 0xda8   :  { %3102 = vmatpush3.bf16.msra.mxu1 %v3099_v34  ;;  %v2258_v34 = vld [vmem:[#allocation2] ss:$0 sm:$0xff] }
 0xe62   :  { %v2692_v46 = vpop.f32.mrb[16].mxu1 }
 0xe63   :  { %v1839_v37 = vadd.f32 %v2692_v46, %v2250_v36  ;;  %v1833_v51 = vpop.f32.mrb[17].mxu1 }
 0xe64   :  { %v1834_v38 = vadd.f32 %v2250_v36, %v1833_v51 }
 0xe65   :  { %v1843_v43 = vadd.f32 %v1839_v37, %v3917_v42 }
 0xe66   :  { %v1842_v44 = vadd.f32 %v1834_v38, %v3915_v59 }
 0xe67   :  { %1850 = vadd.xlane.f32.xlu1 %v1843_v43 }
 0xe68   :  { %1848 = vadd.xlane.f32.xlu0 %v1842_v44 }
 0xef4   :  { %v1851_v42 = vpop.xlane.xlu1 %1850 }
 0xef5   :  { %v1853_v40 = vmul.f32 0.0078125, %v1851_v42  ;;  %v1849_v59 = vpop.xlane.xlu0 %1848  ;;  %v3103_v42 = vpack.c.bf16 %v2004_v27, %v2003_v41 }
 0xef6   :  { %v1852_v62 = vmul.f32 0.0078125, %v1849_v59 }
 0xef7   :  { %v4050_v63 = vsub.f32 %v1843_v43, %v1853_v40  ;;  %v2251_v43 = vld [vmem:[#allocation8 + $0x1] ss:$0 sm:$0xff]  ;;  %3104 = vmatprep.subr.bf16.mxu1 %v3103_v42  ;;  %v2253_v40 = vld [vmem:[#allocation12 + $0x1] ss:$0 sm:$0xff] }
 0xef8   :  { %v4052_v0 = vsub.f32 %v1842_v44, %v1852_v62  ;;  %3106 = vmatpush3.bf16.msra.mxu1 %v3103_v42 }
 0xef9   :  { %v1857_v2 = vmul.f32 %v4050_v63, %v4050_v63 }
 0xefa   :  { %v1856_v3 = vmul.f32 %v4052_v0, %v4052_v0 }
 0xefb   :  { %1860 = vadd.xlane.f32.xlu1 %v1857_v2 }
 0xefc   :  { %1858 = vadd.xlane.f32.xlu0 %v1856_v3 }
 0xf88   :  { %v1861_v35 = vpop.xlane.xlu1 %1860 }
 0xf89   :  { %v1863_v57 = vmul.f32 0.0078125, %v1861_v35  ;;  %v1859_v36 = vpop.xlane.xlu0 %1858 }
 0xf8a   :  { %v1862_v46 = vmul.f32 0.0078125, %v1859_v36 }
 0xf8b   :  { %v1865_v37 = vadd.f32 1e-05, %v1863_v57 }
 0xf8c   :  { %v1864_v51 = vadd.f32 1e-05, %v1862_v46 }
 0xf8d   :  { %3164 = vrsqrt.f32 %v1865_v37 }
 0xf8e   :  { %3166 = vrsqrt.f32 %v1864_v51 }
 0xf97   :  { %v3165_v38 = vpop.eup %3164 }
 0xf98   :  { %v3167_v44 = vpop.eup %3166  ;;  %v1869_v45 = vmul.f32 %v3165_v38, %v4050_v63 }
 0xf99   :  { %v1868_v47 = vmul.f32 %v3167_v44, %v4052_v0  ;;  %v2254_v0 = vld [vmem:[#allocation15 + $0x1] ss:$0 sm:$0xff] }
 0xf9a   :  { %v1877_v49 = vmul.f32 %v2251_v43, %v1869_v45 }
 0xf9b   :  { %v1876_v50 = vmul.f32 %v2251_v43, %v1868_v47 }
 0xf9c   :  { %v1885_v58 = vadd.f32 %v2252_v48, %v1877_v49 }
 0xf9d   :  { %v1884_v53 = vadd.f32 %v2252_v48, %v1876_v50 }
 0xf9f   :  { %2725 = vmatprep.mubr.f32.mxu0 %v1884_v53 }
 0xfa0   :  { %2726 = vmatmul.mubr.f32.vlgmr.msra.gmra.mrb[18].mxu0 %v1885_v58 }
0x1073   :  { %v2727_v59 = vpop.f32.mrb[18].mxu0 }
0x1074   :  { %v1983_v62 = vadd.f32 %v2727_v59, %v2253_v40  ;;  %v1977_v2 = vpop.f32.mrb[19].mxu0 }
0x1075   :  { %v1978_v3 = vadd.f32 %v2253_v40, %v1977_v2 }
0x1076   :  { %v1987_v6 = vmax.f32 %v1983_v62, 0.0 }
0x1077   :  { %v1986_v63 = vmax.f32 %v1978_v3, 0.0 }
0x1079   :  { %2760 = vmatprep.mubr.f32.mxu1 %v1986_v63 }
0x107a   :  { %2761 = vmatmul.mubr.f32.vlgmr.msra.gmra.mrb[18].mxu1 %v1987_v6 }
0x114d   :  { %v2762_v7 = vpop.f32.mrb[18].mxu1 }
0x114e   :  { %v2085_v8 = vadd.f32 %v2762_v7, %v2254_v0  ;;  %v2079_v9 = vpop.f32.mrb[19].mxu1 }
0x114f   :  { %v2080_v10 = vadd.f32 %v2254_v0, %v2079_v9 }
0x1150   :  { %v2089_v11 = vadd.f32 %v2085_v8, %v1885_v58 }
0x1151   :  { %v2088_v12 = vadd.f32 %v2080_v10, %v1884_v53 }
0x1152   :  { %2096 = vadd.xlane.f32.xlu1 %v2089_v11 }
0x1153   :  { %2094 = vadd.xlane.f32.xlu0 %v2088_v12 }
0x11df   :  { %v2097_v56 = vpop.xlane.xlu1 %2096 }
0x11e0   :  { %v2099_v21 = vmul.f32 0.0078125, %v2097_v56  ;;  %v2095_v60 = vpop.xlane.xlu0 %2094 }
0x11e1   :  { %v2098_v61 = vmul.f32 0.0078125, %v2095_v60 }
0x11e2   :  { %v2101_v5 = vsub.f32 %v2089_v11, %v2099_v21 }
0x11e3   :  { %v2100_v13 = vsub.f32 %v2088_v12, %v2098_v61 }
0x11e4   :  { %v2103_v14 = vmul.f32 %v2101_v5, %v2101_v5 }
0x11e5   :  { %v2102_v15 = vmul.f32 %v2100_v13, %v2100_v13 }
0x11e6   :  { %2106 = vadd.xlane.f32.xlu1 %v2103_v14 }
0x11e7   :  { %2104 = vadd.xlane.f32.xlu0 %v2102_v15 }
0x1273   :  { %v2107_v1 = vpop.xlane.xlu1 %2106 }
0x1274   :  { %v2109_v17 = vmul.f32 0.0078125, %v2107_v1  ;;  %v2105_v4 = vpop.xlane.xlu0 %2104 }
0x1275   :  { %v2108_v18 = vmul.f32 0.0078125, %v2105_v4 }
0x1276   :  { %v2111_v19 = vadd.f32 1e-05, %v2109_v17 }
0x1277   :  { %v2110_v20 = vadd.f32 1e-05, %v2108_v18 }
0x1278   :  { %3168 = vrsqrt.f32 %v2111_v19 }
0x1279   :  { %3170 = vrsqrt.f32 %v2110_v20 }
0x1282   :  { %v3169_v22 = vpop.eup %3168 }
0x1283   :  { %v3171_v24 = vpop.eup %3170  ;;  %v2115_v25 = vmul.f32 %v3169_v22, %v2101_v5 }
0x1284   :  { %v2114_v28 = vmul.f32 %v3171_v24, %v2100_v13 }
0x1285   :  { %v2123_v29 = vmul.f32 %v2255_v23, %v2115_v25 }
0x1286   :  { %v2122_v52 = vmul.f32 %v2255_v23, %v2114_v28 }
0x1287   :  { %v2131_v39 = vadd.f32 %v2256_v26, %v2123_v29 }
0x1288   :  { %v2130_v31 = vadd.f32 %v2256_v26, %v2122_v52 }
0x1289   :  { %v2142_v32 = vmul.f32 %v2257_v30, %v2131_v39  ;;  %2133 = vst [vmem:[#allocation20 + $0x8] sm:$0xff] %v2131_v39 }
0x128a   :  { %v2141_v33 = vmul.f32 %v2257_v30, %v2130_v31  ;;  %2132 = vst [vmem:[#allocation20] sm:$0xff] %v2130_v31 }
0x128b   :  { %2145 = vadd.xlane.f32.xlu1 %v2142_v32 }
0x128c   :  { %2143 = vadd.xlane.f32.xlu0 %v2141_v33 }
0x12a2   :  { %2154 = vperm.xlu0 %3131, %v2258_v34  }
0x12a3   :  { %3403 = shalt.err (!%p3400_p0)
}
0x12a4   :  { %s3404_s25 = scalar_lea.hbm %s4108_s16, 256 }
0x12a5   :  { %p3405_p1 = scmp.ne.s32.totalorder %s4108_s16, %s3404_s25  ;;  %p3408_p2 = scmp.lt.u32.totalorder %s3404_s25, %s4108_s16 }
0x12a7   :  { %p3410_p3 = pnand %p3408_p2, %p3405_p1 }
0x12a9   :  { %3413 = shalt.err (!%p3410_p3)
}
0x12aa   :  { %2185 = dma.vmem_to_hbm [thread:$0]  %s2180_s23, 256, %s4108_s16, [#allocation5], %s3465_s6, %s3465_s6, %s3466_s9   ;;  %v2163_v57 = vsub.s32 %v3743_v55, %v3741_v54  ;;  %vm2169_vm5 = vcmask 1041409   ;;  %vm2172_vm6 = vcmask 58368  }
0x12ab   :  { %s3475_s13 = smov [#allocation21]  }
0x12ac   :  { %s2192_s2 = sshll.u32 %s3475_s13, 4  ;;  %s2193_s2 = int_to_ptr.vmem [resolvable:$true] %s2192_s2 }
0x12ad   :  { %s3414_s27 = scalar_lea.vmem %s2193_s2, 32  ;;  %p3419_p5 = scmp.lt.s32.totalorder %s2193_s2, %s2193_s2 }
0x12ae   :  { %p3415_p4 = scmp.ne.s32.totalorder %s2193_s2, %s3414_s27  ;;  %p3420_p6 = scmp.lt.s32.totalorder %s3414_s27, %s3414_s27 }
0x12b0   :  { %p3421_p7 = por %p3420_p6, %p3419_p5 }
0x12b2   :  { %p3422_p8 = pnand %p3421_p7, %p3415_p4 }
0x1318   :  { %v2146_v36 = vpop.xlane.xlu1 %2145 }
0x1319   :  { %v2144_v35 = vpop.xlane.xlu0 %2143 }
0x1321   :  { %v2155_v46 = vpop.permute.xlu0 %2154 }
0x1322   :  { %v2157_v37 = vadd.f32 %v2155_v46, %v2144_v35  ;;  %v2158_v51 = vadd.f32 %v2155_v46, %v2146_v36 }
0x1324   :  { %v2164_v38 = vrot.slane %v2157_v37, %v2163_v57  ;;  %v2168_v43 = vrot.slane %v2158_v51, %v2163_v57 }
0x1326   :  { %v2170_v44 = vsel %vm2169_vm5, %v2168_v43, %v2164_v38 }
0x1327   :  { %2173 = vst.msk [vmem:[#allocation21] sm:$0x3] %vm2172_vm6, %v2170_v44 }
0x1328   :  { %3425 = shalt.err (!%p3422_p8)
}
0x1329   :  { %s4126_s9 = sld [smem:[#allocation35_spill]] }
0x132f   :  { %s3426_s3 = scalar_lea.hbm %s4126_s9, 32 }
0x1330   :  { %p3427_p9 = scmp.ne.s32.totalorder %s4126_s9, %s3426_s3  ;;  %p3430_p10 = scmp.lt.u32.totalorder %s3426_s3, %s4126_s9 }
0x1332   :  { %p3432_p11 = pnand %p3430_p10, %p3427_p9 }
0x1334   :  { %3435 = shalt.err (!%p3432_p11)
}
0x1335   :  { %2195 = dma.vmem_to_hbm [thread:$0]  %s2193_s2, 32, %s4126_s9, [#allocation22]  }
0x1336   :  { %3448 = dma.done.wait [#allocation5], 256  }
0x1337   :  { %3449 = vsyncadd [#allocation5], 4294967040 }
0x1338   :  { %3450 = dma.done.wait [#allocation22], 32  }
0x1339   :  { %3451 = vsyncadd [#allocation22], 4294967264 }
0x133a   :  { %2210 = vsyncpa [#allocation4], 1 }
0x133b   :  { %2211 = vsyncpa [#allocation7], 1 }
0x133c   :  { %2212 = vsyncpa [#allocation10], 1 }
0x133d   :  { %2213 = vsyncpa [#allocation13], 1 }
0x133e   :  { %2214 = vsyncpa [#allocation16], 1 }
0x133f   :  { %2215 = vsyncpa [#allocation19], 1 }
0x1340   :  { %2216 = vsyncpa [#allocation5], 1 }
0x1341   :  { %2217 = vsyncpa [#allocation22], 1 }

</bundles_post_ra>
